<compile_context>
chip_gen: v7x
topology: tpu7x:2x2x1
jax: 0.10.0
libtpu: 0.0.40
codegen_flags: <defaults>
</compile_context>

<pallas_src>
import functools
import math

import jax
import jax.numpy as jnp
from jax.experimental import pallas as pl
from jax.experimental.pallas import tpu as pltpu

COMPUTE_DTYPE = jnp.bfloat16   # MXU operand dtype; accumulation & all vector math stay f32.
LN_EPS = 1e-5                  # PyTorch TransformerEncoderLayer / LayerNorm default.

# Tile targets (conservative enough for v7x's 64 MiB VMEM with double buffering;
# on v5e/v6e (128 MiB) these can be raised together with vmem_limit_bytes).
TM, TN, TK = 256, 512, 512


def _tile(dim, target, align):
    """Largest tile <= target that is a multiple of `align` and evenly divides `dim`;
    falls back to the full dim (always legal for BlockSpec)."""
    if dim <= target:
        return dim
    t = (target // align) * align
    while t >= align:
        if dim % t == 0:
            return t
        t -= align
    return dim


def _isize(dt):
    return jnp.dtype(dt).itemsize


# ----------------------------------------------------------------------------
# Tiled linear:  o = act(x @ w + b)
# Weights arrive pre-cast (COMPUTE_DTYPE) and bias pre-shaped (1, N) f32.
# ----------------------------------------------------------------------------
def _linear_kernel(x_ref, w_ref, b_ref, o_ref, acc_ref, *, activation):
    k = pl.program_id(2)

    @pl.when(k == 0)
    def _():
        acc_ref[...] = jnp.zeros_like(acc_ref)

    acc_ref[...] += jnp.dot(x_ref[...].astype(COMPUTE_DTYPE), w_ref[...],
                            preferred_element_type=jnp.float32)

    @pl.when(k == pl.num_programs(2) - 1)
    def _():
        y = acc_ref[...] + b_ref[...]
        if activation == "relu":
            y = jnp.maximum(y, 0.0)
        o_ref[...] = y.astype(o_ref.dtype)


def linear(x, w, b, activation=None, out_dtype=jnp.float32, *, tm=TM, tn=TN, tk=TK):
    """x:(M,K), w:(K,N) COMPUTE_DTYPE, b:(1,N) f32 -> (M,N) out_dtype."""
    M, K = x.shape
    K2, N = w.shape
    assert K == K2 and b.shape == (1, N)
    tm = _tile(M, tm, 8)
    tn = _tile(N, tn, 128)
    tk = _tile(K, tk, 128)
    cost = pl.CostEstimate(
        flops=int(2 * M * N * K), transcendentals=0,
        bytes_accessed=int(M * K * _isize(x.dtype) + K * N * _isize(w.dtype)
                           + M * N * _isize(out_dtype) + N * 4))
    return pl.pallas_call(
        functools.partial(_linear_kernel, activation=activation),
        out_shape=jax.ShapeDtypeStruct((M, N), out_dtype),
        grid=(M // tm, N // tn, K // tk),
        in_specs=[
            pl.BlockSpec((tm, tk), lambda i, j, k: (i, k)),
            pl.BlockSpec((tk, tn), lambda i, j, k: (k, j)),
            pl.BlockSpec((1, tn), lambda i, j, k: (0, j)),
        ],
        out_specs=pl.BlockSpec((tm, tn), lambda i, j, k: (i, j)),
        scratch_shapes=[pltpu.VMEM((tm, tn), jnp.float32)],
        compiler_params=pltpu.CompilerParams(
            dimension_semantics=("parallel", "parallel", "arbitrary")),
        cost_estimate=cost,
    )(x, w, b)


# ----------------------------------------------------------------------------
# Tiled linear fused with residual add + LayerNorm (used for FF2 + norm2):
#   o = LayerNorm(residual + x @ w + b)
# Full output row (tn = N = d_model) stays resident so the LN reduction is in-register.
# ----------------------------------------------------------------------------
def _linear_res_ln_kernel(x_ref, w_ref, b_ref, r_ref, g_ref, bb_ref, o_ref, acc_ref, *, eps):
    k = pl.program_id(1)

    @pl.when(k == 0)
    def _():
        acc_ref[...] = jnp.zeros_like(acc_ref)

    acc_ref[...] += jnp.dot(x_ref[...].astype(COMPUTE_DTYPE), w_ref[...],
                            preferred_element_type=jnp.float32)

    @pl.when(k == pl.num_programs(1) - 1)
    def _():
        y = acc_ref[...] + b_ref[...] + r_ref[...]
        mean = jnp.mean(y, axis=-1, keepdims=True)
        var = jnp.mean((y - mean) ** 2, axis=-1, keepdims=True)
        yn = (y - mean) * jax.lax.rsqrt(var + eps)
        o_ref[...] = (yn * g_ref[...] + bb_ref[...]).astype(o_ref.dtype)


def linear_residual_layernorm(x, w, b, residual, gamma, beta, *, tm=TM, tk=TK, eps=LN_EPS):
    M, K = x.shape
    K2, N = w.shape
    assert K == K2 and residual.shape == (M, N)
    tm = _tile(M, tm, 8)
    tk = _tile(K, tk, 128)
    cost = pl.CostEstimate(
        flops=int(2 * M * N * K + 10 * M * N), transcendentals=int(M),
        bytes_accessed=int(M * K * _isize(x.dtype) + K * N * _isize(w.dtype)
                           + 2 * M * N * 4 + 3 * N * 4))
    return pl.pallas_call(
        functools.partial(_linear_res_ln_kernel, eps=eps),
        out_shape=jax.ShapeDtypeStruct((M, N), residual.dtype),
        grid=(M // tm, K // tk),
        in_specs=[
            pl.BlockSpec((tm, tk), lambda i, k: (i, k)),
            pl.BlockSpec((tk, N), lambda i, k: (k, 0)),
            pl.BlockSpec((1, N), lambda i, k: (0, 0)),
            pl.BlockSpec((tm, N), lambda i, k: (i, 0)),     # residual (constant over k)
            pl.BlockSpec((1, N), lambda i, k: (0, 0)),
            pl.BlockSpec((1, N), lambda i, k: (0, 0)),
        ],
        out_specs=pl.BlockSpec((tm, N), lambda i, k: (i, 0)),
        scratch_shapes=[pltpu.VMEM((tm, N), jnp.float32)],
        compiler_params=pltpu.CompilerParams(
            dimension_semantics=("parallel", "arbitrary")),
        cost_estimate=cost,
        input_output_aliases={3: 0},   # residual buffer reused for the output
    )(x, w, b, residual, gamma, beta)


# ----------------------------------------------------------------------------
# Fused attention sub-layer (one pallas_call, grid over batch):
#   o = LayerNorm(x + out_proj(per-head softmax attention(QKV proj(x))))
# QKV is ONE lane-dense matmul (S,D)@(D,3D); per-head context vectors are written into a
# lane-dense (S,D) VMEM scratch; out_proj is ONE (S,D)@(D,D) matmul.
# ----------------------------------------------------------------------------
def _mha_ln_kernel(x_ref, w_in_ref, b_in_ref, wo_ref, bo_ref, g_ref, bb_ref,
                   o_ref, ctx_ref, *, n_head, dh, scale, eps):
    x = x_ref[...]                                        # (S, D) f32 (kept f32 for residual/LN)
    D = x.shape[-1]
    xc = x.astype(COMPUTE_DTYPE)

    # Single lane-dense QKV projection, f32 accumulate + bias, then ONE cast per operand
    # (instead of per-head casts).
    qkv = jnp.dot(xc, w_in_ref[...], preferred_element_type=jnp.float32) + b_in_ref[...]
    qc = (qkv[:, :D] * scale).astype(COMPUTE_DTYPE)       # fold 1/sqrt(dh) into q
    kc = qkv[:, D:2 * D].astype(COMPUTE_DTYPE)
    vc = qkv[:, 2 * D:].astype(COMPUTE_DTYPE)

    # Per-head softmax attention; context vectors land at head offsets in a (S, D) scratch
    # so out_proj runs as a single K=D contraction.
    # TODO(synk): tile K/V with an online softmax (flash-style) for long sequences.
    for h in range(n_head):
        sl = slice(h * dh, (h + 1) * dh)
        s = jnp.einsum("qd,kd->qk", qc[:, sl], kc[:, sl],
                       preferred_element_type=jnp.float32)          # (S, S)
        m = jnp.max(s, axis=-1, keepdims=True)
        p = jnp.exp(s - m)
        l = jnp.sum(p, axis=-1, keepdims=True)
        p = p * pl.reciprocal(l, approx=True)                        # EUP slot
        ctx_ref[:, sl] = jnp.dot(p.astype(COMPUTE_DTYPE), vc[:, sl],
                                 preferred_element_type=jnp.float32)  # (S, dh)

    # Single out-projection + bias, residual add, LayerNorm.
    attn = jnp.dot(ctx_ref[...].astype(COMPUTE_DTYPE), wo_ref[...],
                   preferred_element_type=jnp.float32) + bo_ref[...]
    y = x + attn
    mean = jnp.mean(y, axis=-1, keepdims=True)
    var = jnp.mean((y - mean) ** 2, axis=-1, keepdims=True)
    yn = (y - mean) * jax.lax.rsqrt(var + eps)
    o_ref[...] = (yn * g_ref[...] + bb_ref[...]).astype(o_ref.dtype)


def mha_block_layernorm(x2, p, S, B, D, H, eps=LN_EPS):
    """x2: (B*S, D) f32 (row order b*S + s) -> (B*S, D) f32 = LayerNorm(x + SelfAttn(x))."""
    assert D % H == 0, "d_model must be divisible by n_head"
    dh = D // H
    wbytes = _isize(p["w_in"].dtype)
    full2 = lambda shape: pl.BlockSpec(shape, lambda b: (0, 0))
    cost = pl.CostEstimate(
        flops=int(B * (8 * S * D * D + 4 * S * S * D)),
        transcendentals=int(B * H * S * S + 2 * B * S),
        bytes_accessed=int(2 * B * S * D * 4 + 4 * D * D * wbytes + 6 * D * 4))
    return pl.pallas_call(
        functools.partial(_mha_ln_kernel, n_head=H, dh=dh,
                          scale=1.0 / math.sqrt(dh), eps=eps),
        out_shape=jax.ShapeDtypeStruct((B * S, D), jnp.float32),
        grid=(B,),
        in_specs=[
            pl.BlockSpec((S, D), lambda b: (b, 0)),   # x: one batch's (S, D) slab
            full2((D, 3 * D)),                        # packed in-proj weight
            full2((1, 3 * D)),                        # packed in-proj bias
            full2((D, D)),                            # out-proj weight
            full2((1, D)),                            # out-proj bias
            full2((1, D)),                            # norm1 gamma
            full2((1, D)),                            # norm1 beta
        ],
        out_specs=pl.BlockSpec((S, D), lambda b: (b, 0)),
        scratch_shapes=[pltpu.VMEM((S, D), jnp.float32)],   # per-head context accumulator
        compiler_params=pltpu.CompilerParams(dimension_semantics=("parallel",)),
        cost_estimate=cost,
    )(x2, p["w_in"], p["b_in"], p["wo"], p["bo"], p["norm1_g"], p["norm1_b"])


# ----------------------------------------------------------------------------
# Model glue
# ----------------------------------------------------------------------------
def encoder_layer(x2, S, B, D, H, p):
    """One post-norm nn.TransformerEncoderLayer (relu, dim_feedforward=2048, eval mode)."""
    x2 = mha_block_layernorm(x2, p, S, B, D, H)                        # attn + residual + norm1
    # FF1 intermediate emitted directly in COMPUTE_DTYPE: largest activation, and its only
    # consumer (FF2 matmul) casts to COMPUTE_DTYPE anyway -> halves HBM traffic.
    h = linear(x2, p["ff1_w"], p["ff1_b"], activation="relu", out_dtype=COMPUTE_DTYPE)
    x2 = linear_residual_layernorm(h, p["ff2_w"], p["ff2_b"], x2,
                                   p["norm2_g"], p["norm2_b"])         # ff2 + residual + norm2
    return x2


def my_transformer_ts_forward(x, params, n_head, n_output):
    """x: (S, B, n_input) float32 -> (S, B, n_output). `params` are prepare_params() outputs."""
    S, B, D = x.shape
    # Single transpose so each batch's sequence is a contiguous (S, D) slab (row = b*S + s);
    # everything downstream runs on the flat (B*S, D) residual stream.
    x2 = jnp.transpose(x, (1, 0, 2)).reshape(B * S, D)
    x2 = linear(x2, params["embed_w"], params["embed_b"])
    for lp in params["layers"]:
        x2 = encoder_layer(x2, S, B, D, n_head, lp)
    y = linear(x2, params["fc_w"], params["fc_b"])   # lane-padded output (unmasked stores)
    y = y[:, :n_output]                              # strip lane padding in XLA
    return jnp.transpose(y.reshape(B, S, n_output), (1, 0, 2))


# ----------------------------------------------------------------------------
# Parameter construction & one-time packing
# NOTE: weights are stored (in, out) and used as x @ W; PyTorch stores (out, in) and
# computes x @ W.T — transpose when porting real checkpoints.
# ----------------------------------------------------------------------------
def init_params(key, n_input, n_output, n_head, num_layers, dim_ff=2048):
    def w(key, shape, scale=0.02):
        return jax.random.normal(key, shape, jnp.float32) * scale

    keys = iter(jax.random.split(key, 4 + num_layers * 6))
    D = n_input
    params = {
        "embed_w": w(next(keys), (D, D)),
        "embed_b": jnp.zeros((D,), jnp.float32),
        "fc_w": w(next(keys), (D, n_output)),
        "fc_b": jnp.zeros((n_output,), jnp.float32),
        "layers": [],
    }
    for _ in range(num_layers):
        params["layers"].append({
            "in_proj_w": w(next(keys), (D, 3 * D)),
            "in_proj_b": jnp.zeros((3 * D,), jnp.float32),
            "out_proj_w": w(next(keys), (D, D)),
            "out_proj_b": jnp.zeros((D,), jnp.float32),
            "ff1_w": w(next(keys), (D, dim_ff)),
            "ff1_b": jnp.zeros((dim_ff,), jnp.float32),
            "ff2_w": w(next(keys), (dim_ff, D)),
            "ff2_b": jnp.zeros((D,), jnp.float32),
            "norm1_g": jnp.ones((D,), jnp.float32),
            "norm1_b": jnp.zeros((D,), jnp.float32),
            "norm2_g": jnp.ones((D,), jnp.float32),
            "norm2_b": jnp.zeros((D,), jnp.float32),
        })
    return params


def prepare_params(params):
    """One-time (outside jit) weight packing: cast matmul operands to COMPUTE_DTYPE, reshape
    biases/LN params to (1, N) f32, and lane-pad the output head to a multiple of 128 so the
    final store path is lane-dense. Eliminates all per-forward-call weight repack/cast traffic."""
    cd = COMPUTE_DTYPE
    D = params["embed_w"].shape[0]
    n_output = params["fc_w"].shape[1]
    n_out_pad = ((n_output + 127) // 128) * 128
    fc_w = jnp.zeros((D, n_out_pad), cd).at[:, :n_output].set(params["fc_w"].astype(cd))
    fc_b = jnp.zeros((1, n_out_pad), jnp.float32).at[:, :n_output].set(params["fc_b"])
    out = {
        "embed_w": params["embed_w"].astype(cd),
        "embed_b": params["embed_b"].reshape(1, -1).astype(jnp.float32),
        "fc_w": fc_w,
        "fc_b": fc_b,
        "layers": [],
    }
    for lp in params["layers"]:
        out["layers"].append({
            "w_in": lp["in_proj_w"].astype(cd),                             # (D, 3D)
            "b_in": lp["in_proj_b"].reshape(1, -1).astype(jnp.float32),     # (1, 3D)
            "wo": lp["out_proj_w"].astype(cd),                              # (D, D)
            "bo": lp["out_proj_b"].reshape(1, -1).astype(jnp.float32),
            "norm1_g": lp["norm1_g"].reshape(1, -1).astype(jnp.float32),
            "norm1_b": lp["norm1_b"].reshape(1, -1).astype(jnp.float32),
            "ff1_w": lp["ff1_w"].astype(cd),
            "ff1_b": lp["ff1_b"].reshape(1, -1).astype(jnp.float32),
            "ff2_w": lp["ff2_w"].astype(cd),
            "ff2_b": lp["ff2_b"].reshape(1, -1).astype(jnp.float32),
            "norm2_g": lp["norm2_g"].reshape(1, -1).astype(jnp.float32),
            "norm2_b": lp["norm2_b"].reshape(1, -1).astype(jnp.float32),
        })
    return out


# ----------------------------------------------------------------------------
if __name__ == "__main__":
    # Small shapes: seq=8, batch=2, n_input(d_model)=32, n_head=4, num_layers=2, n_output=16
    S, B, n_input, n_head, num_layers, n_output = 8, 2, 32, 4, 2, 16

    key = jax.random.PRNGKey(0)
    kx, kp = jax.random.split(key)
    x = jax.random.normal(kx, (S, B, n_input), jnp.float32)
    raw_params = init_params(kp, n_input, n_output, n_head, num_layers)
    params = prepare_params(raw_params)   # one-time packing, outside jit

    fwd = jax.jit(functools.partial(my_transformer_ts_forward,
                                    n_head=n_head, n_output=n_output))
    out = jax.block_until_ready(fwd(x, params))

    assert out.shape == (S, B, n_output), out.shape
    assert bool(jnp.all(jnp.isfinite(out)))
    print("KERNEL_OK")
</pallas_src>

<mosaic_0001>
module attributes {stable_mosaic.version = 11 : i64} {
  func.func @_linear_kernel(%arg0: i32, %arg1: i32, %arg2: i32, %arg3: memref<16x32xf32, #tpu.memory_space<vmem>>, %arg4: memref<32x32xbf16, #tpu.memory_space<vmem>>, %arg5: memref<1x32xf32, #tpu.memory_space<vmem>>, %arg6: memref<16x32xf32, #tpu.memory_space<vmem>>, %arg7: memref<16x32xf32, #tpu.memory_space<vmem>>) attributes {dimension_semantics = [#tpu.dimension_semantics<parallel>, #tpu.dimension_semantics<parallel>, #tpu.dimension_semantics<arbitrary>], iteration_bounds = array<i64: 1, 1, 1>, scalar_prefetch = 0 : i64, scratch_operands = 1 : i64, tpu.core_type = #tpu.core_type<tc>, window_params = [{transform_indices = @transform_0, window_bounds = array<i64: 16, 32>}, {transform_indices = @transform_1, window_bounds = array<i64: 32, 32>}, {transform_indices = @transform_2, window_bounds = array<i64: 1, 32>}, {transform_indices = @transform_3, window_bounds = array<i64: 16, 32>}]} {
    %c0_i32 = arith.constant 0 : i32
    %0 = arith.cmpi eq, %arg2, %c0_i32 : i32
    %1 = arith.extui %0 : i1 to i32
    %c0_i32_0 = arith.constant 0 : i32
    %2 = arith.cmpi ne, %1, %c0_i32_0 : i32
    scf.if %2 {
      %cst_10 = arith.constant 0.000000e+00 : f32
      %13 = vector.broadcast %cst_10 : f32 to vector<16x32xf32>
      %c0_11 = arith.constant 0 : index
      %c0_12 = arith.constant 0 : index
      %14 = vector.load %arg7[%c0_11, %c0_12] : memref<16x32xf32, #tpu.memory_space<vmem>>, vector<16x32xf32>
      tpu.vector_store %arg7[%c0_11, %c0_12], %13 {strides = array<i32>} : memref<16x32xf32, #tpu.memory_space<vmem>>, vector<16x32xf32>,
    } else {
    }
    %c0 = arith.constant 0 : index
    %c0_1 = arith.constant 0 : index
    %3 = vector.load %arg7[%c0, %c0_1] : memref<16x32xf32, #tpu.memory_space<vmem>>, vector<16x32xf32>
    %c0_2 = arith.constant 0 : index
    %c0_3 = arith.constant 0 : index
    %4 = vector.load %arg3[%c0_2, %c0_3] : memref<16x32xf32, #tpu.memory_space<vmem>>, vector<16x32xf32>
    %5 = arith.truncf %4 : vector<16x32xf32> to vector<16x32xbf16>
    %c0_4 = arith.constant 0 : index
    %c0_5 = arith.constant 0 : index
    %6 = vector.load %arg4[%c0_4, %c0_5] : memref<32x32xbf16, #tpu.memory_space<vmem>>, vector<32x32xbf16>
    %cst = arith.constant dense<0.000000e+00> : vector<16x32xf32>
    %7 = tpu.matmul %5, %6, %cst {dimension_numbers = #tpu.dot_dimension_numbers<[1], [0], [0], [1], [0, 0, 1, 1], [], []>} : vector<16x32xbf16>, vector<32x32xbf16>, vector<16x32xf32> -> vector<16x32xf32>
    %8 = arith.addf %3, %7 : vector<16x32xf32>
    %c0_6 = arith.constant 0 : index
    %c0_7 = arith.constant 0 : index
    %9 = vector.load %arg7[%c0_6, %c0_7] : memref<16x32xf32, #tpu.memory_space<vmem>>, vector<16x32xf32>
    tpu.vector_store %arg7[%c0_6, %c0_7], %8 {strides = array<i32>} : memref<16x32xf32, #tpu.memory_space<vmem>>, vector<16x32xf32>,
    %c0_i32_8 = arith.constant 0 : i32
    %10 = arith.cmpi eq, %arg2, %c0_i32_8 : i32
    %11 = arith.extui %10 : i1 to i32
    %c0_i32_9 = arith.constant 0 : i32
    %12 = arith.cmpi ne, %11, %c0_i32_9 : i32
    scf.if %12 {
      %c0_10 = arith.constant 0 : index
      %c0_11 = arith.constant 0 : index
      %13 = vector.load %arg7[%c0_10, %c0_11] : memref<16x32xf32, #tpu.memory_space<vmem>>, vector<16x32xf32>
      %c0_12 = arith.constant 0 : index
      %c0_13 = arith.constant 0 : index
      %14 = vector.load %arg5[%c0_12, %c0_13] : memref<1x32xf32, #tpu.memory_space<vmem>>, vector<1x32xf32>
      %15 = vector.broadcast %14 : vector<1x32xf32> to vector<16x32xf32>
      %16 = arith.addf %13, %15 : vector<16x32xf32>
      %c0_14 = arith.constant 0 : index
      %c0_15 = arith.constant 0 : index
      %17 = vector.load %arg6[%c0_14, %c0_15] : memref<16x32xf32, #tpu.memory_space<vmem>>, vector<16x32xf32>
      tpu.vector_store %arg6[%c0_14, %c0_15], %16 {strides = array<i32>} : memref<16x32xf32, #tpu.memory_space<vmem>>, vector<16x32xf32>,
    } else {
    }
    return
  }
  func.func @transform_0(%arg0: i32, %arg1: i32, %arg2: i32) -> (i32, i32) {
    %c0_i32 = arith.constant 0 : i32
    return %arg0, %arg2 : i32, i32
  }
  func.func @transform_1(%arg0: i32, %arg1: i32, %arg2: i32) -> (i32, i32) {
    %c0_i32 = arith.constant 0 : i32
    return %arg2, %arg1 : i32, i32
  }
  func.func @transform_2(%arg0: i32, %arg1: i32, %arg2: i32) -> (i32, i32) {
    %c0_i32 = arith.constant 0 : i32
    %c0_i32_0 = arith.constant 0 : i32
    return %c0_i32, %arg1 : i32, i32
  }
  func.func @transform_3(%arg0: i32, %arg1: i32, %arg2: i32) -> (i32, i32) {
    %c0_i32 = arith.constant 0 : i32
    return %arg0, %arg1 : i32, i32
  }
}

module attributes {stable_mosaic.version = 11 : i64} {
  func.func @_linear_kernel(%arg0: i32, %arg1: i32, %arg2: i32, %arg3: memref<16x32xf32, #tpu.memory_space<vmem>>, %arg4: memref<32x512xbf16, #tpu.memory_space<vmem>>, %arg5: memref<1x512xf32, #tpu.memory_space<vmem>>, %arg6: memref<16x512xbf16, #tpu.memory_space<vmem>>, %arg7: memref<16x512xf32, #tpu.memory_space<vmem>>) attributes {dimension_semantics = [#tpu.dimension_semantics<parallel>, #tpu.dimension_semantics<parallel>, #tpu.dimension_semantics<arbitrary>], iteration_bounds = array<i64: 1, 4, 1>, scalar_prefetch = 0 : i64, scratch_operands = 1 : i64, tpu.core_type = #tpu.core_type<tc>, window_params = [{transform_indices = @transform_0, window_bounds = array<i64: 16, 32>}, {transform_indices = @transform_1, window_bounds = array<i64: 32, 512>}, {transform_indices = @transform_2, window_bounds = array<i64: 1, 512>}, {transform_indices = @transform_3, window_bounds = array<i64: 16, 512>}]} {
    %c0_i32 = arith.constant 0 : i32
    %0 = arith.cmpi eq, %arg2, %c0_i32 : i32
    %1 = arith.extui %0 : i1 to i32
    %c0_i32_0 = arith.constant 0 : i32
    %2 = arith.cmpi ne, %1, %c0_i32_0 : i32
    scf.if %2 {
      %cst_10 = arith.constant 0.000000e+00 : f32
      %13 = vector.broadcast %cst_10 : f32 to vector<16x512xf32>
      %c0_11 = arith.constant 0 : index
      %c0_12 = arith.constant 0 : index
      %14 = vector.load %arg7[%c0_11, %c0_12] : memref<16x512xf32, #tpu.memory_space<vmem>>, vector<16x512xf32>
      tpu.vector_store %arg7[%c0_11, %c0_12], %13 {strides = array<i32>} : memref<16x512xf32, #tpu.memory_space<vmem>>, vector<16x512xf32>,
    } else {
    }
    %c0 = arith.constant 0 : index
    %c0_1 = arith.constant 0 : index
    %3 = vector.load %arg7[%c0, %c0_1] : memref<16x512xf32, #tpu.memory_space<vmem>>, vector<16x512xf32>
    %c0_2 = arith.constant 0 : index
    %c0_3 = arith.constant 0 : index
    %4 = vector.load %arg3[%c0_2, %c0_3] : memref<16x32xf32, #tpu.memory_space<vmem>>, vector<16x32xf32>
    %5 = arith.truncf %4 : vector<16x32xf32> to vector<16x32xbf16>
    %c0_4 = arith.constant 0 : index
    %c0_5 = arith.constant 0 : index
    %6 = vector.load %arg4[%c0_4, %c0_5] : memref<32x512xbf16, #tpu.memory_space<vmem>>, vector<32x512xbf16>
    %cst = arith.constant dense<0.000000e+00> : vector<16x512xf32>
    %7 = tpu.matmul %5, %6, %cst {dimension_numbers = #tpu.dot_dimension_numbers<[1], [0], [0], [1], [0, 0, 1, 1], [], []>} : vector<16x32xbf16>, vector<32x512xbf16>, vector<16x512xf32> -> vector<16x512xf32>
    %8 = arith.addf %3, %7 : vector<16x512xf32>
    %c0_6 = arith.constant 0 : index
    %c0_7 = arith.constant 0 : index
    %9 = vector.load %arg7[%c0_6, %c0_7] : memref<16x512xf32, #tpu.memory_space<vmem>>, vector<16x512xf32>
    tpu.vector_store %arg7[%c0_6, %c0_7], %8 {strides = array<i32>} : memref<16x512xf32, #tpu.memory_space<vmem>>, vector<16x512xf32>,
    %c0_i32_8 = arith.constant 0 : i32
    %10 = arith.cmpi eq, %arg2, %c0_i32_8 : i32
    %11 = arith.extui %10 : i1 to i32
    %c0_i32_9 = arith.constant 0 : i32
    %12 = arith.cmpi ne, %11, %c0_i32_9 : i32
    scf.if %12 {
      %c0_10 = arith.constant 0 : index
      %c0_11 = arith.constant 0 : index
      %13 = vector.load %arg7[%c0_10, %c0_11] : memref<16x512xf32, #tpu.memory_space<vmem>>, vector<16x512xf32>
      %c0_12 = arith.constant 0 : index
      %c0_13 = arith.constant 0 : index
      %14 = vector.load %arg5[%c0_12, %c0_13] : memref<1x512xf32, #tpu.memory_space<vmem>>, vector<1x512xf32>
      %15 = vector.broadcast %14 : vector<1x512xf32> to vector<16x512xf32>
      %16 = arith.addf %13, %15 : vector<16x512xf32>
      %cst_14 = arith.constant 0.000000e+00 : f32
      %17 = vector.broadcast %cst_14 : f32 to vector<16x512xf32>
      %18 = arith.maximumf %16, %17 : vector<16x512xf32>
      %19 = arith.truncf %18 : vector<16x512xf32> to vector<16x512xbf16>
      %c0_15 = arith.constant 0 : index
      %c0_16 = arith.constant 0 : index
      %20 = vector.load %arg6[%c0_15, %c0_16] : memref<16x512xbf16, #tpu.memory_space<vmem>>, vector<16x512xbf16>
      tpu.vector_store %arg6[%c0_15, %c0_16], %19 {strides = array<i32>} : memref<16x512xbf16, #tpu.memory_space<vmem>>, vector<16x512xbf16>,
    } else {
    }
    return
  }
  func.func @transform_0(%arg0: i32, %arg1: i32, %arg2: i32) -> (i32, i32) {
    %c0_i32 = arith.constant 0 : i32
    return %arg0, %arg2 : i32, i32
  }
  func.func @transform_1(%arg0: i32, %arg1: i32, %arg2: i32) -> (i32, i32) {
    %c0_i32 = arith.constant 0 : i32
    return %arg2, %arg1 : i32, i32
  }
  func.func @transform_2(%arg0: i32, %arg1: i32, %arg2: i32) -> (i32, i32) {
    %c0_i32 = arith.constant 0 : i32
    %c0_i32_0 = arith.constant 0 : i32
    return %c0_i32, %arg1 : i32, i32
  }
  func.func @transform_3(%arg0: i32, %arg1: i32, %arg2: i32) -> (i32, i32) {
    %c0_i32 = arith.constant 0 : i32
    return %arg0, %arg1 : i32, i32
  }
}

module attributes {stable_mosaic.version = 11 : i64} {
  func.func @_mha_ln_kernel(%arg0: i32, %arg1: memref<8x32xf32, #tpu.memory_space<vmem>>, %arg2: memref<32x96xbf16, #tpu.memory_space<vmem>>, %arg3: memref<1x96xf32, #tpu.memory_space<vmem>>, %arg4: memref<32x32xbf16, #tpu.memory_space<vmem>>, %arg5: memref<1x32xf32, #tpu.memory_space<vmem>>, %arg6: memref<1x32xf32, #tpu.memory_space<vmem>>, %arg7: memref<1x32xf32, #tpu.memory_space<vmem>>, %arg8: memref<8x32xf32, #tpu.memory_space<vmem>>, %arg9: memref<8x32xf32, #tpu.memory_space<vmem>>) attributes {dimension_semantics = [#tpu.dimension_semantics<parallel>], iteration_bounds = array<i64: 2>, scalar_prefetch = 0 : i64, scratch_operands = 1 : i64, tpu.core_type = #tpu.core_type<tc>, window_params = [{transform_indices = @transform_0, window_bounds = array<i64: 8, 32>}, {pipeline_mode = #tpu.pipeline_mode<synchronous>, transform_indices = @transform_1, window_bounds = array<i64: 32, 96>}, {pipeline_mode = #tpu.pipeline_mode<synchronous>, transform_indices = @transform_2, window_bounds = array<i64: 1, 96>}, {pipeline_mode = #tpu.pipeline_mode<synchronous>, transform_indices = @transform_3, window_bounds = array<i64: 32, 32>}, {pipeline_mode = #tpu.pipeline_mode<synchronous>, transform_indices = @transform_4, window_bounds = array<i64: 1, 32>}, {pipeline_mode = #tpu.pipeline_mode<synchronous>, transform_indices = @transform_5, window_bounds = array<i64: 1, 32>}, {pipeline_mode = #tpu.pipeline_mode<synchronous>, transform_indices = @transform_6, window_bounds = array<i64: 1, 32>}, {transform_indices = @transform_7, window_bounds = array<i64: 8, 32>}]} {
    %c0 = arith.constant 0 : index
    %c0_0 = arith.constant 0 : index
    %0 = vector.load %arg1[%c0, %c0_0] : memref<8x32xf32, #tpu.memory_space<vmem>>, vector<8x32xf32>
    %1 = arith.truncf %0 : vector<8x32xf32> to vector<8x32xbf16>
    %c0_1 = arith.constant 0 : index
    %c0_2 = arith.constant 0 : index
    %2 = vector.load %arg2[%c0_1, %c0_2] : memref<32x96xbf16, #tpu.memory_space<vmem>>, vector<32x96xbf16>
    %cst = arith.constant dense<0.000000e+00> : vector<8x96xf32>
    %3 = tpu.matmul %1, %2, %cst {dimension_numbers = #tpu.dot_dimension_numbers<[1], [0], [0], [1], [0, 0, 1, 1], [], []>} : vector<8x32xbf16>, vector<32x96xbf16>, vector<8x96xf32> -> vector<8x96xf32>
    %c0_3 = arith.constant 0 : index
    %c0_4 = arith.constant 0 : index
    %4 = vector.load %arg3[%c0_3, %c0_4] : memref<1x96xf32, #tpu.memory_space<vmem>>, vector<1x96xf32>
    %5 = vector.broadcast %4 : vector<1x96xf32> to vector<8x96xf32>
    %6 = arith.addf %3, %5 : vector<8x96xf32>
    %7 = vector.extract_strided_slice %6 {offsets = [0, 0], sizes = [8, 32], strides = [1, 1]} : vector<8x96xf32> to vector<8x32xf32>
    %cst_5 = arith.constant 0.353553385 : f32
    %8 = vector.broadcast %cst_5 : f32 to vector<8x32xf32>
    %9 = arith.mulf %7, %8 : vector<8x32xf32>
    %10 = arith.truncf %9 : vector<8x32xf32> to vector<8x32xbf16>
    %11 = vector.extract_strided_slice %6 {offsets = [0, 32], sizes = [8, 32], strides = [1, 1]} : vector<8x96xf32> to vector<8x32xf32>
    %12 = arith.truncf %11 : vector<8x32xf32> to vector<8x32xbf16>
    %13 = vector.extract_strided_slice %6 {offsets = [0, 64], sizes = [8, 32], strides = [1, 1]} : vector<8x96xf32> to vector<8x32xf32>
    %14 = arith.truncf %13 : vector<8x32xf32> to vector<8x32xbf16>
    %15 = vector.extract_strided_slice %10 {offsets = [0, 0], sizes = [8, 8], strides = [1, 1]} : vector<8x32xbf16> to vector<8x8xbf16>
    %16 = vector.extract_strided_slice %12 {offsets = [0, 0], sizes = [8, 8], strides = [1, 1]} : vector<8x32xbf16> to vector<8x8xbf16>
    "tpu.trace_start"() <{level = 10 : i32, message = "qd,kd->qk"}> : () -> ()
    %cst_6 = arith.constant dense<0.000000e+00> : vector<8x8xf32>
    %17 = tpu.matmul %15, %16, %cst_6 {dimension_numbers = #tpu.dot_dimension_numbers<[1], [1], [0], [0], [0, 0, 1, 0], [], []>} : vector<8x8xbf16>, vector<8x8xbf16>, vector<8x8xf32> -> vector<8x8xf32>
    "tpu.trace_stop"() : () -> ()
    %cst_7 = arith.constant dense<0xFF800000> : vector<8xf32>
    %18 = vector.multi_reduction <maximumf>, %17, %cst_7 [1] : vector<8x8xf32> to vector<8xf32>
    %19 = vector.shape_cast %18 : vector<8xf32> to vector<8x1xf32>
    %20 = vector.broadcast %19 : vector<8x1xf32> to vector<8x8xf32>
    %21 = arith.subf %17, %20 : vector<8x8xf32>
    %22 = math.exp %21 : vector<8x8xf32>
    %cst_8 = arith.constant dense<0.000000e+00> : vector<8xf32>
    %23 = vector.multi_reduction <add>, %22, %cst_8 [1] : vector<8x8xf32> to vector<8xf32>
    %24 = vector.shape_cast %23 : vector<8xf32> to vector<8x1xf32>
    %25 = tpu.reciprocal %24 {approx = true} : vector<8x1xf32> -> vector<8x1xf32>
    %26 = vector.broadcast %25 : vector<8x1xf32> to vector<8x8xf32>
    %27 = arith.mulf %22, %26 : vector<8x8xf32>
    %28 = arith.truncf %27 : vector<8x8xf32> to vector<8x8xbf16>
    %29 = vector.extract_strided_slice %14 {offsets = [0, 0], sizes = [8, 8], strides = [1, 1]} : vector<8x32xbf16> to vector<8x8xbf16>
    %cst_9 = arith.constant dense<0.000000e+00> : vector<8x8xf32>
    %30 = tpu.matmul %28, %29, %cst_9 {dimension_numbers = #tpu.dot_dimension_numbers<[1], [0], [0], [1], [0, 0, 1, 1], [], []>} : vector<8x8xbf16>, vector<8x8xbf16>, vector<8x8xf32> -> vector<8x8xf32>
    %c0_10 = arith.constant 0 : index
    %c0_11 = arith.constant 0 : index
    %31 = vector.load %arg9[%c0_10, %c0_11] : memref<8x32xf32, #tpu.memory_space<vmem>>, vector<8x8xf32>
    tpu.vector_store %arg9[%c0_10, %c0_11], %30 {strides = array<i32>} : memref<8x32xf32, #tpu.memory_space<vmem>>, vector<8x8xf32>,
    %32 = vector.extract_strided_slice %10 {offsets = [0, 8], sizes = [8, 8], strides = [1, 1]} : vector<8x32xbf16> to vector<8x8xbf16>
    %33 = vector.extract_strided_slice %12 {offsets = [0, 8], sizes = [8, 8], strides = [1, 1]} : vector<8x32xbf16> to vector<8x8xbf16>
    "tpu.trace_start"() <{level = 10 : i32, message = "qd,kd->qk"}> : () -> ()
    %cst_12 = arith.constant dense<0.000000e+00> : vector<8x8xf32>
    %34 = tpu.matmul %32, %33, %cst_12 {dimension_numbers = #tpu.dot_dimension_numbers<[1], [1], [0], [0], [0, 0, 1, 0], [], []>} : vector<8x8xbf16>, vector<8x8xbf16>, vector<8x8xf32> -> vector<8x8xf32>
    "tpu.trace_stop"() : () -> ()
    %cst_13 = arith.constant dense<0xFF800000> : vector<8xf32>
    %35 = vector.multi_reduction <maximumf>, %34, %cst_13 [1] : vector<8x8xf32> to vector<8xf32>
    %36 = vector.shape_cast %35 : vector<8xf32> to vector<8x1xf32>
    %37 = vector.broadcast %36 : vector<8x1xf32> to vector<8x8xf32>
    %38 = arith.subf %34, %37 : vector<8x8xf32>
    %39 = math.exp %38 : vector<8x8xf32>
    %cst_14 = arith.constant dense<0.000000e+00> : vector<8xf32>
    %40 = vector.multi_reduction <add>, %39, %cst_14 [1] : vector<8x8xf32> to vector<8xf32>
    %41 = vector.shape_cast %40 : vector<8xf32> to vector<8x1xf32>
    %42 = tpu.reciprocal %41 {approx = true} : vector<8x1xf32> -> vector<8x1xf32>
    %43 = vector.broadcast %42 : vector<8x1xf32> to vector<8x8xf32>
    %44 = arith.mulf %39, %43 : vector<8x8xf32>
    %45 = arith.truncf %44 : vector<8x8xf32> to vector<8x8xbf16>
    %46 = vector.extract_strided_slice %14 {offsets = [0, 8], sizes = [8, 8], strides = [1, 1]} : vector<8x32xbf16> to vector<8x8xbf16>
    %cst_15 = arith.constant dense<0.000000e+00> : vector<8x8xf32>
    %47 = tpu.matmul %45, %46, %cst_15 {dimension_numbers = #tpu.dot_dimension_numbers<[1], [0], [0], [1], [0, 0, 1, 1], [], []>} : vector<8x8xbf16>, vector<8x8xbf16>, vector<8x8xf32> -> vector<8x8xf32>
    %c0_16 = arith.constant 0 : index
    %c8 = arith.constant 8 : index
    %48 = vector.load %arg9[%c0_16, %c8] : memref<8x32xf32, #tpu.memory_space<vmem>>, vector<8x8xf32>
    tpu.vector_store %arg9[%c0_16, %c8], %47 {strides = array<i32>} : memref<8x32xf32, #tpu.memory_space<vmem>>, vector<8x8xf32>,
    %49 = vector.extract_strided_slice %10 {offsets = [0, 16], sizes = [8, 8], strides = [1, 1]} : vector<8x32xbf16> to vector<8x8xbf16>
    %50 = vector.extract_strided_slice %12 {offsets = [0, 16], sizes = [8, 8], strides = [1, 1]} : vector<8x32xbf16> to vector<8x8xbf16>
    "tpu.trace_start"() <{level = 10 : i32, message = "qd,kd->qk"}> : () -> ()
    %cst_17 = arith.constant dense<0.000000e+00> : vector<8x8xf32>
    %51 = tpu.matmul %49, %50, %cst_17 {dimension_numbers = #tpu.dot_dimension_numbers<[1], [1], [0], [0], [0, 0, 1, 0], [], []>} : vector<8x8xbf16>, vector<8x8xbf16>, vector<8x8xf32> -> vector<8x8xf32>
    "tpu.trace_stop"() : () -> ()
    %cst_18 = arith.constant dense<0xFF800000> : vector<8xf32>
    %52 = vector.multi_reduction <maximumf>, %51, %cst_18 [1] : vector<8x8xf32> to vector<8xf32>
    %53 = vector.shape_cast %52 : vector<8xf32> to vector<8x1xf32>
    %54 = vector.broadcast %53 : vector<8x1xf32> to vector<8x8xf32>
    %55 = arith.subf %51, %54 : vector<8x8xf32>
    %56 = math.exp %55 : vector<8x8xf32>
    %cst_19 = arith.constant dense<0.000000e+00> : vector<8xf32>
    %57 = vector.multi_reduction <add>, %56, %cst_19 [1] : vector<8x8xf32> to vector<8xf32>
    %58 = vector.shape_cast %57 : vector<8xf32> to vector<8x1xf32>
    %59 = tpu.reciprocal %58 {approx = true} : vector<8x1xf32> -> vector<8x1xf32>
    %60 = vector.broadcast %59 : vector<8x1xf32> to vector<8x8xf32>
    %61 = arith.mulf %56, %60 : vector<8x8xf32>
    %62 = arith.truncf %61 : vector<8x8xf32> to vector<8x8xbf16>
    %63 = vector.extract_strided_slice %14 {offsets = [0, 16], sizes = [8, 8], strides = [1, 1]} : vector<8x32xbf16> to vector<8x8xbf16>
    %cst_20 = arith.constant dense<0.000000e+00> : vector<8x8xf32>
    %64 = tpu.matmul %62, %63, %cst_20 {dimension_numbers = #tpu.dot_dimension_numbers<[1], [0], [0], [1], [0, 0, 1, 1], [], []>} : vector<8x8xbf16>, vector<8x8xbf16>, vector<8x8xf32> -> vector<8x8xf32>
    %c0_21 = arith.constant 0 : index
    %c16 = arith.constant 16 : index
    %65 = vector.load %arg9[%c0_21, %c16] : memref<8x32xf32, #tpu.memory_space<vmem>>, vector<8x8xf32>
    tpu.vector_store %arg9[%c0_21, %c16], %64 {strides = array<i32>} : memref<8x32xf32, #tpu.memory_space<vmem>>, vector<8x8xf32>,
    %66 = vector.extract_strided_slice %10 {offsets = [0, 24], sizes = [8, 8], strides = [1, 1]} : vector<8x32xbf16> to vector<8x8xbf16>
    %67 = vector.extract_strided_slice %12 {offsets = [0, 24], sizes = [8, 8], strides = [1, 1]} : vector<8x32xbf16> to vector<8x8xbf16>
    "tpu.trace_start"() <{level = 10 : i32, message = "qd,kd->qk"}> : () -> ()
    %cst_22 = arith.constant dense<0.000000e+00> : vector<8x8xf32>
    %68 = tpu.matmul %66, %67, %cst_22 {dimension_numbers = #tpu.dot_dimension_numbers<[1], [1], [0], [0], [0, 0, 1, 0], [], []>} : vector<8x8xbf16>, vector<8x8xbf16>, vector<8x8xf32> -> vector<8x8xf32>
    "tpu.trace_stop"() : () -> ()
    %cst_23 = arith.constant dense<0xFF800000> : vector<8xf32>
    %69 = vector.multi_reduction <maximumf>, %68, %cst_23 [1] : vector<8x8xf32> to vector<8xf32>
    %70 = vector.shape_cast %69 : vector<8xf32> to vector<8x1xf32>
    %71 = vector.broadcast %70 : vector<8x1xf32> to vector<8x8xf32>
    %72 = arith.subf %68, %71 : vector<8x8xf32>
    %73 = math.exp %72 : vector<8x8xf32>
    %cst_24 = arith.constant dense<0.000000e+00> : vector<8xf32>
    %74 = vector.multi_reduction <add>, %73, %cst_24 [1] : vector<8x8xf32> to vector<8xf32>
    %75 = vector.shape_cast %74 : vector<8xf32> to vector<8x1xf32>
    %76 = tpu.reciprocal %75 {approx = true} : vector<8x1xf32> -> vector<8x1xf32>
    %77 = vector.broadcast %76 : vector<8x1xf32> to vector<8x8xf32>
    %78 = arith.mulf %73, %77 : vector<8x8xf32>
    %79 = arith.truncf %78 : vector<8x8xf32> to vector<8x8xbf16>
    %80 = vector.extract_strided_slice %14 {offsets = [0, 24], sizes = [8, 8], strides = [1, 1]} : vector<8x32xbf16> to vector<8x8xbf16>
    %cst_25 = arith.constant dense<0.000000e+00> : vector<8x8xf32>
    %81 = tpu.matmul %79, %80, %cst_25 {dimension_numbers = #tpu.dot_dimension_numbers<[1], [0], [0], [1], [0, 0, 1, 1], [], []>} : vector<8x8xbf16>, vector<8x8xbf16>, vector<8x8xf32> -> vector<8x8xf32>
    %c0_26 = arith.constant 0 : index
    %c24 = arith.constant 24 : index
    %82 = vector.load %arg9[%c0_26, %c24] : memref<8x32xf32, #tpu.memory_space<vmem>>, vector<8x8xf32>
    tpu.vector_store %arg9[%c0_26, %c24], %81 {strides = array<i32>} : memref<8x32xf32, #tpu.memory_space<vmem>>, vector<8x8xf32>,
    %c0_27 = arith.constant 0 : index
    %c0_28 = arith.constant 0 : index
    %83 = vector.load %arg9[%c0_27, %c0_28] : memref<8x32xf32, #tpu.memory_space<vmem>>, vector<8x32xf32>
    %84 = arith.truncf %83 : vector<8x32xf32> to vector<8x32xbf16>
    %c0_29 = arith.constant 0 : index
    %c0_30 = arith.constant 0 : index
    %85 = vector.load %arg4[%c0_29, %c0_30] : memref<32x32xbf16, #tpu.memory_space<vmem>>, vector<32x32xbf16>
    %cst_31 = arith.constant dense<0.000000e+00> : vector<8x32xf32>
    %86 = tpu.matmul %84, %85, %cst_31 {dimension_numbers = #tpu.dot_dimension_numbers<[1], [0], [0], [1], [0, 0, 1, 1], [], []>} : vector<8x32xbf16>, vector<32x32xbf16>, vector<8x32xf32> -> vector<8x32xf32>
    %c0_32 = arith.constant 0 : index
    %c0_33 = arith.constant 0 : index
    %87 = vector.load %arg5[%c0_32, %c0_33] : memref<1x32xf32, #tpu.memory_space<vmem>>, vector<1x32xf32>
    %88 = vector.broadcast %87 : vector<1x32xf32> to vector<8x32xf32>
    %89 = arith.addf %86, %88 : vector<8x32xf32>
    %90 = arith.addf %0, %89 : vector<8x32xf32>
    %cst_34 = arith.constant dense<0.000000e+00> : vector<8xf32>
    %91 = vector.multi_reduction <add>, %90, %cst_34 [1] : vector<8x32xf32> to vector<8xf32>
    %92 = vector.shape_cast %91 : vector<8xf32> to vector<8x1xf32>
    %cst_35 = arith.constant 3.200000e+01 : f32
    %93 = vector.broadcast %cst_35 : f32 to vector<8x1xf32>
    %94 = arith.divf %92, %93 : vector<8x1xf32>
    %95 = vector.broadcast %94 : vector<8x1xf32> to vector<8x32xf32>
    %96 = arith.subf %90, %95 : vector<8x32xf32>
    %97 = arith.mulf %96, %96 : vector<8x32xf32>
    %cst_36 = arith.constant dense<0.000000e+00> : vector<8xf32>
    %98 = vector.multi_reduction <add>, %97, %cst_36 [1] : vector<8x32xf32> to vector<8xf32>
    %99 = vector.shape_cast %98 : vector<8xf32> to vector<8x1xf32>
    %cst_37 = arith.constant 3.200000e+01 : f32
    %100 = vector.broadcast %cst_37 : f32 to vector<8x1xf32>
    %101 = arith.divf %99, %100 : vector<8x1xf32>
    %102 = vector.broadcast %94 : vector<8x1xf32> to vector<8x32xf32>
    %103 = arith.subf %90, %102 : vector<8x32xf32>
    %cst_38 = arith.constant 9.99999974E-6 : f32
    %104 = vector.broadcast %cst_38 : f32 to vector<8x1xf32>
    %105 = arith.addf %101, %104 : vector<8x1xf32>
    %106 = math.rsqrt %105 : vector<8x1xf32>
    %107 = vector.broadcast %106 : vector<8x1xf32> to vector<8x32xf32>
    %108 = arith.mulf %103, %107 : vector<8x32xf32>
    %c0_39 = arith.constant 0 : index
    %c0_40 = arith.constant 0 : index
    %109 = vector.load %arg6[%c0_39, %c0_40] : memref<1x32xf32, #tpu.memory_space<vmem>>, vector<1x32xf32>
    %110 = vector.broadcast %109 : vector<1x32xf32> to vector<8x32xf32>
    %111 = arith.mulf %108, %110 : vector<8x32xf32>
    %c0_41 = arith.constant 0 : index
    %c0_42 = arith.constant 0 : index
    %112 = vector.load %arg7[%c0_41, %c0_42] : memref<1x32xf32, #tpu.memory_space<vmem>>, vector<1x32xf32>
    %113 = vector.broadcast %112 : vector<1x32xf32> to vector<8x32xf32>
    %114 = arith.addf %111, %113 : vector<8x32xf32>
    %c0_43 = arith.constant 0 : index
    %c0_44 = arith.constant 0 : index
    %115 = vector.load %arg8[%c0_43, %c0_44] : memref<8x32xf32, #tpu.memory_space<vmem>>, vector<8x32xf32>
    tpu.vector_store %arg8[%c0_43, %c0_44], %114 {strides = array<i32>} : memref<8x32xf32, #tpu.memory_space<vmem>>, vector<8x32xf32>,
    return
  }
  func.func @transform_0(%arg0: i32) -> (i32, i32) {
    %c0_i32 = arith.constant 0 : i32
    %c0_i32_0 = arith.constant 0 : i32
    return %arg0, %c0_i32 : i32, i32
  }
  func.func @transform_1(%arg0: i32) -> (i32, i32) {
    %c0_i32 = arith.constant 0 : i32
    %c0_i32_0 = arith.constant 0 : i32
    %c0_i32_1 = arith.constant 0 : i32
    return %c0_i32, %c0_i32_0 : i32, i32
  }
  func.func @transform_2(%arg0: i32) -> (i32, i32) {
    %c0_i32 = arith.constant 0 : i32
    %c0_i32_0 = arith.constant 0 : i32
    %c0_i32_1 = arith.constant 0 : i32
    return %c0_i32, %c0_i32_0 : i32, i32
  }
  func.func @transform_3(%arg0: i32) -> (i32, i32) {
    %c0_i32 = arith.constant 0 : i32
    %c0_i32_0 = arith.constant 0 : i32
    %c0_i32_1 = arith.constant 0 : i32
    return %c0_i32, %c0_i32_0 : i32, i32
  }
  func.func @transform_4(%arg0: i32) -> (i32, i32) {
    %c0_i32 = arith.constant 0 : i32
    %c0_i32_0 = arith.constant 0 : i32
    %c0_i32_1 = arith.constant 0 : i32
    return %c0_i32, %c0_i32_0 : i32, i32
  }
  func.func @transform_5(%arg0: i32) -> (i32, i32) {
    %c0_i32 = arith.constant 0 : i32
    %c0_i32_0 = arith.constant 0 : i32
    %c0_i32_1 = arith.constant 0 : i32
    return %c0_i32, %c0_i32_0 : i32, i32
  }
  func.func @transform_6(%arg0: i32) -> (i32, i32) {
    %c0_i32 = arith.constant 0 : i32
    %c0_i32_0 = arith.constant 0 : i32
    %c0_i32_1 = arith.constant 0 : i32
    return %c0_i32, %c0_i32_0 : i32, i32
  }
  func.func @transform_7(%arg0: i32) -> (i32, i32) {
    %c0_i32 = arith.constant 0 : i32
    %c0_i32_0 = arith.constant 0 : i32
    return %arg0, %c0_i32 : i32, i32
  }
}

module attributes {stable_mosaic.version = 11 : i64} {
  func.func @_linear_res_ln_kernel(%arg0: i32, %arg1: i32, %arg2: memref<16x512xbf16, #tpu.memory_space<vmem>>, %arg3: memref<512x32xbf16, #tpu.memory_space<vmem>>, %arg4: memref<1x32xf32, #tpu.memory_space<vmem>>, %arg5: memref<16x32xf32, #tpu.memory_space<vmem>>, %arg6: memref<1x32xf32, #tpu.memory_space<vmem>>, %arg7: memref<1x32xf32, #tpu.memory_space<vmem>>, %arg8: memref<16x32xf32, #tpu.memory_space<vmem>>, %arg9: memref<16x32xf32, #tpu.memory_space<vmem>>) attributes {dimension_semantics = [#tpu.dimension_semantics<parallel>, #tpu.dimension_semantics<arbitrary>], iteration_bounds = array<i64: 1, 4>, scalar_prefetch = 0 : i64, scratch_operands = 1 : i64, tpu.core_type = #tpu.core_type<tc>, window_params = [{transform_indices = @transform_0, window_bounds = array<i64: 16, 512>}, {transform_indices = @transform_1, window_bounds = array<i64: 512, 32>}, {pipeline_mode = #tpu.pipeline_mode<synchronous>, transform_indices = @transform_2, window_bounds = array<i64: 1, 32>}, {transform_indices = @transform_3, window_bounds = array<i64: 16, 32>}, {pipeline_mode = #tpu.pipeline_mode<synchronous>, transform_indices = @transform_4, window_bounds = array<i64: 1, 32>}, {pipeline_mode = #tpu.pipeline_mode<synchronous>, transform_indices = @transform_5, window_bounds = array<i64: 1, 32>}, {transform_indices = @transform_6, window_bounds = array<i64: 16, 32>}]} {
    %c0_i32 = arith.constant 0 : i32
    %0 = arith.cmpi eq, %arg1, %c0_i32 : i32
    %1 = arith.extui %0 : i1 to i32
    %c0_i32_0 = arith.constant 0 : i32
    %2 = arith.cmpi ne, %1, %c0_i32_0 : i32
    scf.if %2 {
      %cst_9 = arith.constant 0.000000e+00 : f32
      %12 = vector.broadcast %cst_9 : f32 to vector<16x32xf32>
      %c0_10 = arith.constant 0 : index
      %c0_11 = arith.constant 0 : index
      %13 = vector.load %arg9[%c0_10, %c0_11] : memref<16x32xf32, #tpu.memory_space<vmem>>, vector<16x32xf32>
      tpu.vector_store %arg9[%c0_10, %c0_11], %12 {strides = array<i32>} : memref<16x32xf32, #tpu.memory_space<vmem>>, vector<16x32xf32>,
    } else {
    }
    %c0 = arith.constant 0 : index
    %c0_1 = arith.constant 0 : index
    %3 = vector.load %arg9[%c0, %c0_1] : memref<16x32xf32, #tpu.memory_space<vmem>>, vector<16x32xf32>
    %c0_2 = arith.constant 0 : index
    %c0_3 = arith.constant 0 : index
    %4 = vector.load %arg2[%c0_2, %c0_3] : memref<16x512xbf16, #tpu.memory_space<vmem>>, vector<16x512xbf16>
    %c0_4 = arith.constant 0 : index
    %c0_5 = arith.constant 0 : index
    %5 = vector.load %arg3[%c0_4, %c0_5] : memref<512x32xbf16, #tpu.memory_space<vmem>>, vector<512x32xbf16>
    %cst = arith.constant dense<0.000000e+00> : vector<16x32xf32>
    %6 = tpu.matmul %4, %5, %cst {dimension_numbers = #tpu.dot_dimension_numbers<[1], [0], [0], [1], [0, 0, 1, 1], [], []>} : vector<16x512xbf16>, vector<512x32xbf16>, vector<16x32xf32> -> vector<16x32xf32>
    %7 = arith.addf %3, %6 : vector<16x32xf32>
    %c0_6 = arith.constant 0 : index
    %c0_7 = arith.constant 0 : index
    %8 = vector.load %arg9[%c0_6, %c0_7] : memref<16x32xf32, #tpu.memory_space<vmem>>, vector<16x32xf32>
    tpu.vector_store %arg9[%c0_6, %c0_7], %7 {strides = array<i32>} : memref<16x32xf32, #tpu.memory_space<vmem>>, vector<16x32xf32>,
    %c3_i32 = arith.constant 3 : i32
    %9 = arith.cmpi eq, %arg1, %c3_i32 : i32
    %10 = arith.extui %9 : i1 to i32
    %c0_i32_8 = arith.constant 0 : i32
    %11 = arith.cmpi ne, %10, %c0_i32_8 : i32
    scf.if %11 {
      %c0_9 = arith.constant 0 : index
      %c0_10 = arith.constant 0 : index
      %12 = vector.load %arg9[%c0_9, %c0_10] : memref<16x32xf32, #tpu.memory_space<vmem>>, vector<16x32xf32>
      %c0_11 = arith.constant 0 : index
      %c0_12 = arith.constant 0 : index
      %13 = vector.load %arg4[%c0_11, %c0_12] : memref<1x32xf32, #tpu.memory_space<vmem>>, vector<1x32xf32>
      %14 = vector.broadcast %13 : vector<1x32xf32> to vector<16x32xf32>
      %15 = arith.addf %12, %14 : vector<16x32xf32>
      %c0_13 = arith.constant 0 : index
      %c0_14 = arith.constant 0 : index
      %16 = vector.load %arg5[%c0_13, %c0_14] : memref<16x32xf32, #tpu.memory_space<vmem>>, vector<16x32xf32>
      %17 = arith.addf %15, %16 : vector<16x32xf32>
      %cst_15 = arith.constant dense<0.000000e+00> : vector<16xf32>
      %18 = vector.multi_reduction <add>, %17, %cst_15 [1] : vector<16x32xf32> to vector<16xf32>
      %19 = vector.shape_cast %18 : vector<16xf32> to vector<16x1xf32>
      %cst_16 = arith.constant 3.200000e+01 : f32
      %20 = vector.broadcast %cst_16 : f32 to vector<16x1xf32>
      %21 = arith.divf %19, %20 : vector<16x1xf32>
      %22 = vector.broadcast %21 : vector<16x1xf32> to vector<16x32xf32>
      %23 = arith.subf %17, %22 : vector<16x32xf32>
      %24 = arith.mulf %23, %23 : vector<16x32xf32>
      %cst_17 = arith.constant dense<0.000000e+00> : vector<16xf32>
      %25 = vector.multi_reduction <add>, %24, %cst_17 [1] : vector<16x32xf32> to vector<16xf32>
      %26 = vector.shape_cast %25 : vector<16xf32> to vector<16x1xf32>
      %cst_18 = arith.constant 3.200000e+01 : f32
      %27 = vector.broadcast %cst_18 : f32 to vector<16x1xf32>
      %28 = arith.divf %26, %27 : vector<16x1xf32>
      %29 = vector.broadcast %21 : vector<16x1xf32> to vector<16x32xf32>
      %30 = arith.subf %17, %29 : vector<16x32xf32>
      %cst_19 = arith.constant 9.99999974E-6 : f32
      %31 = vector.broadcast %cst_19 : f32 to vector<16x1xf32>
      %32 = arith.addf %28, %31 : vector<16x1xf32>
      %33 = math.rsqrt %32 : vector<16x1xf32>
      %34 = vector.broadcast %33 : vector<16x1xf32> to vector<16x32xf32>
      %35 = arith.mulf %30, %34 : vector<16x32xf32>
      %c0_20 = arith.constant 0 : index
      %c0_21 = arith.constant 0 : index
      %36 = vector.load %arg6[%c0_20, %c0_21] : memref<1x32xf32, #tpu.memory_space<vmem>>, vector<1x32xf32>
      %37 = vector.broadcast %36 : vector<1x32xf32> to vector<16x32xf32>
      %38 = arith.mulf %35, %37 : vector<16x32xf32>
      %c0_22 = arith.constant 0 : index
      %c0_23 = arith.constant 0 : index
      %39 = vector.load %arg7[%c0_22, %c0_23] : memref<1x32xf32, #tpu.memory_space<vmem>>, vector<1x32xf32>
      %40 = vector.broadcast %39 : vector<1x32xf32> to vector<16x32xf32>
      %41 = arith.addf %38, %40 : vector<16x32xf32>
      %c0_24 = arith.constant 0 : index
      %c0_25 = arith.constant 0 : index
      %42 = vector.load %arg8[%c0_24, %c0_25] : memref<16x32xf32, #tpu.memory_space<vmem>>, vector<16x32xf32>
      tpu.vector_store %arg8[%c0_24, %c0_25], %41 {strides = array<i32>} : memref<16x32xf32, #tpu.memory_space<vmem>>, vector<16x32xf32>,
    } else {
    }
    return
  }
  func.func @transform_0(%arg0: i32, %arg1: i32) -> (i32, i32) {
    %c0_i32 = arith.constant 0 : i32
    return %arg0, %arg1 : i32, i32
  }
  func.func @transform_1(%arg0: i32, %arg1: i32) -> (i32, i32) {
    %c0_i32 = arith.constant 0 : i32
    %c0_i32_0 = arith.constant 0 : i32
    return %arg1, %c0_i32 : i32, i32
  }
  func.func @transform_2(%arg0: i32, %arg1: i32) -> (i32, i32) {
    %c0_i32 = arith.constant 0 : i32
    %c0_i32_0 = arith.constant 0 : i32
    %c0_i32_1 = arith.constant 0 : i32
    return %c0_i32, %c0_i32_0 : i32, i32
  }
  func.func @transform_3(%arg0: i32, %arg1: i32) -> (i32, i32) {
    %c0_i32 = arith.constant 0 : i32
    %c0_i32_0 = arith.constant 0 : i32
    return %arg0, %c0_i32 : i32, i32
  }
  func.func @transform_4(%arg0: i32, %arg1: i32) -> (i32, i32) {
    %c0_i32 = arith.constant 0 : i32
    %c0_i32_0 = arith.constant 0 : i32
    %c0_i32_1 = arith.constant 0 : i32
    return %c0_i32, %c0_i32_0 : i32, i32
  }
  func.func @transform_5(%arg0: i32, %arg1: i32) -> (i32, i32) {
    %c0_i32 = arith.constant 0 : i32
    %c0_i32_0 = arith.constant 0 : i32
    %c0_i32_1 = arith.constant 0 : i32
    return %c0_i32, %c0_i32_0 : i32, i32
  }
  func.func @transform_6(%arg0: i32, %arg1: i32) -> (i32, i32) {
    %c0_i32 = arith.constant 0 : i32
    %c0_i32_0 = arith.constant 0 : i32
    return %arg0, %c0_i32 : i32, i32
  }
}

module attributes {stable_mosaic.version = 11 : i64} {
  func.func @_linear_kernel(%arg0: i32, %arg1: i32, %arg2: i32, %arg3: memref<16x32xf32, #tpu.memory_space<vmem>>, %arg4: memref<32x512xbf16, #tpu.memory_space<vmem>>, %arg5: memref<1x512xf32, #tpu.memory_space<vmem>>, %arg6: memref<16x512xbf16, #tpu.memory_space<vmem>>, %arg7: memref<16x512xf32, #tpu.memory_space<vmem>>) attributes {dimension_semantics = [#tpu.dimension_semantics<parallel>, #tpu.dimension_semantics<parallel>, #tpu.dimension_semantics<arbitrary>], iteration_bounds = array<i64: 1, 4, 1>, scalar_prefetch = 0 : i64, scratch_operands = 1 : i64, tpu.core_type = #tpu.core_type<tc>, window_params = [{transform_indices = @transform_0, window_bounds = array<i64: 16, 32>}, {transform_indices = @transform_1, window_bounds = array<i64: 32, 512>}, {transform_indices = @transform_2, window_bounds = array<i64: 1, 512>}, {transform_indices = @transform_3, window_bounds = array<i64: 16, 512>}]} {
    %c0_i32 = arith.constant 0 : i32
    %0 = arith.cmpi eq, %arg2, %c0_i32 : i32
    %1 = arith.extui %0 : i1 to i32
    %c0_i32_0 = arith.constant 0 : i32
    %2 = arith.cmpi ne, %1, %c0_i32_0 : i32
    scf.if %2 {
      %cst_10 = arith.constant 0.000000e+00 : f32
      %13 = vector.broadcast %cst_10 : f32 to vector<16x512xf32>
      %c0_11 = arith.constant 0 : index
      %c0_12 = arith.constant 0 : index
      %14 = vector.load %arg7[%c0_11, %c0_12] : memref<16x512xf32, #tpu.memory_space<vmem>>, vector<16x512xf32>
      tpu.vector_store %arg7[%c0_11, %c0_12], %13 {strides = array<i32>} : memref<16x512xf32, #tpu.memory_space<vmem>>, vector<16x512xf32>,
    } else {
    }
    %c0 = arith.constant 0 : index
    %c0_1 = arith.constant 0 : index
    %3 = vector.load %arg7[%c0, %c0_1] : memref<16x512xf32, #tpu.memory_space<vmem>>, vector<16x512xf32>
    %c0_2 = arith.constant 0 : index
    %c0_3 = arith.constant 0 : index
    %4 = vector.load %arg3[%c0_2, %c0_3] : memref<16x32xf32, #tpu.memory_space<vmem>>, vector<16x32xf32>
    %5 = arith.truncf %4 : vector<16x32xf32> to vector<16x32xbf16>
    %c0_4 = arith.constant 0 : index
    %c0_5 = arith.constant 0 : index
    %6 = vector.load %arg4[%c0_4, %c0_5] : memref<32x512xbf16, #tpu.memory_space<vmem>>, vector<32x512xbf16>
    %cst = arith.constant dense<0.000000e+00> : vector<16x512xf32>
    %7 = tpu.matmul %5, %6, %cst {dimension_numbers = #tpu.dot_dimension_numbers<[1], [0], [0], [1], [0, 0, 1, 1], [], []>} : vector<16x32xbf16>, vector<32x512xbf16>, vector<16x512xf32> -> vector<16x512xf32>
    %8 = arith.addf %3, %7 : vector<16x512xf32>
    %c0_6 = arith.constant 0 : index
    %c0_7 = arith.constant 0 : index
    %9 = vector.load %arg7[%c0_6, %c0_7] : memref<16x512xf32, #tpu.memory_space<vmem>>, vector<16x512xf32>
    tpu.vector_store %arg7[%c0_6, %c0_7], %8 {strides = array<i32>} : memref<16x512xf32, #tpu.memory_space<vmem>>, vector<16x512xf32>,
    %c0_i32_8 = arith.constant 0 : i32
    %10 = arith.cmpi eq, %arg2, %c0_i32_8 : i32
    %11 = arith.extui %10 : i1 to i32
    %c0_i32_9 = arith.constant 0 : i32
    %12 = arith.cmpi ne, %11, %c0_i32_9 : i32
    scf.if %12 {
      %c0_10 = arith.constant 0 : index
      %c0_11 = arith.constant 0 : index
      %13 = vector.load %arg7[%c0_10, %c0_11] : memref<16x512xf32, #tpu.memory_space<vmem>>, vector<16x512xf32>
      %c0_12 = arith.constant 0 : index
      %c0_13 = arith.constant 0 : index
      %14 = vector.load %arg5[%c0_12, %c0_13] : memref<1x512xf32, #tpu.memory_space<vmem>>, vector<1x512xf32>
      %15 = vector.broadcast %14 : vector<1x512xf32> to vector<16x512xf32>
      %16 = arith.addf %13, %15 : vector<16x512xf32>
      %cst_14 = arith.constant 0.000000e+00 : f32
      %17 = vector.broadcast %cst_14 : f32 to vector<16x512xf32>
      %18 = arith.maximumf %16, %17 : vector<16x512xf32>
      %19 = arith.truncf %18 : vector<16x512xf32> to vector<16x512xbf16>
      %c0_15 = arith.constant 0 : index
      %c0_16 = arith.constant 0 : index
      %20 = vector.load %arg6[%c0_15, %c0_16] : memref<16x512xbf16, #tpu.memory_space<vmem>>, vector<16x512xbf16>
      tpu.vector_store %arg6[%c0_15, %c0_16], %19 {strides = array<i32>} : memref<16x512xbf16, #tpu.memory_space<vmem>>, vector<16x512xbf16>,
    } else {
    }
    return
  }
  func.func @transform_0(%arg0: i32, %arg1: i32, %arg2: i32) -> (i32, i32) {
    %c0_i32 = arith.constant 0 : i32
    return %arg0, %arg2 : i32, i32
  }
  func.func @transform_1(%arg0: i32, %arg1: i32, %arg2: i32) -> (i32, i32) {
    %c0_i32 = arith.constant 0 : i32
    return %arg2, %arg1 : i32, i32
  }
  func.func @transform_2(%arg0: i32, %arg1: i32, %arg2: i32) -> (i32, i32) {
    %c0_i32 = arith.constant 0 : i32
    %c0_i32_0 = arith.constant 0 : i32
    return %c0_i32, %arg1 : i32, i32
  }
  func.func @transform_3(%arg0: i32, %arg1: i32, %arg2: i32) -> (i32, i32) {
    %c0_i32 = arith.constant 0 : i32
    return %arg0, %arg1 : i32, i32
  }
}

module attributes {stable_mosaic.version = 11 : i64} {
  func.func @_linear_kernel(%arg0: i32, %arg1: i32, %arg2: i32, %arg3: memref<16x32xf32, #tpu.memory_space<vmem>>, %arg4: memref<32x128xbf16, #tpu.memory_space<vmem>>, %arg5: memref<1x128xf32, #tpu.memory_space<vmem>>, %arg6: memref<16x128xf32, #tpu.memory_space<vmem>>, %arg7: memref<16x128xf32, #tpu.memory_space<vmem>>) attributes {dimension_semantics = [#tpu.dimension_semantics<parallel>, #tpu.dimension_semantics<parallel>, #tpu.dimension_semantics<arbitrary>], iteration_bounds = array<i64: 1, 1, 1>, scalar_prefetch = 0 : i64, scratch_operands = 1 : i64, tpu.core_type = #tpu.core_type<tc>, window_params = [{transform_indices = @transform_0, window_bounds = array<i64: 16, 32>}, {transform_indices = @transform_1, window_bounds = array<i64: 32, 128>}, {transform_indices = @transform_2, window_bounds = array<i64: 1, 128>}, {transform_indices = @transform_3, window_bounds = array<i64: 16, 128>}]} {
    %c0_i32 = arith.constant 0 : i32
    %0 = arith.cmpi eq, %arg2, %c0_i32 : i32
    %1 = arith.extui %0 : i1 to i32
    %c0_i32_0 = arith.constant 0 : i32
    %2 = arith.cmpi ne, %1, %c0_i32_0 : i32
    scf.if %2 {
      %cst_10 = arith.constant 0.000000e+00 : f32
      %13 = vector.broadcast %cst_10 : f32 to vector<16x128xf32>
      %c0_11 = arith.constant 0 : index
      %c0_12 = arith.constant 0 : index
      %14 = vector.load %arg7[%c0_11, %c0_12] : memref<16x128xf32, #tpu.memory_space<vmem>>, vector<16x128xf32>
      tpu.vector_store %arg7[%c0_11, %c0_12], %13 {strides = array<i32>} : memref<16x128xf32, #tpu.memory_space<vmem>>, vector<16x128xf32>,
    } else {
    }
    %c0 = arith.constant 0 : index
    %c0_1 = arith.constant 0 : index
    %3 = vector.load %arg7[%c0, %c0_1] : memref<16x128xf32, #tpu.memory_space<vmem>>, vector<16x128xf32>
    %c0_2 = arith.constant 0 : index
    %c0_3 = arith.constant 0 : index
    %4 = vector.load %arg3[%c0_2, %c0_3] : memref<16x32xf32, #tpu.memory_space<vmem>>, vector<16x32xf32>
    %5 = arith.truncf %4 : vector<16x32xf32> to vector<16x32xbf16>
    %c0_4 = arith.constant 0 : index
    %c0_5 = arith.constant 0 : index
    %6 = vector.load %arg4[%c0_4, %c0_5] : memref<32x128xbf16, #tpu.memory_space<vmem>>, vector<32x128xbf16>
    %cst = arith.constant dense<0.000000e+00> : vector<16x128xf32>
    %7 = tpu.matmul %5, %6, %cst {dimension_numbers = #tpu.dot_dimension_numbers<[1], [0], [0], [1], [0, 0, 1, 1], [], []>} : vector<16x32xbf16>, vector<32x128xbf16>, vector<16x128xf32> -> vector<16x128xf32>
    %8 = arith.addf %3, %7 : vector<16x128xf32>
    %c0_6 = arith.constant 0 : index
    %c0_7 = arith.constant 0 : index
    %9 = vector.load %arg7[%c0_6, %c0_7] : memref<16x128xf32, #tpu.memory_space<vmem>>, vector<16x128xf32>
    tpu.vector_store %arg7[%c0_6, %c0_7], %8 {strides = array<i32>} : memref<16x128xf32, #tpu.memory_space<vmem>>, vector<16x128xf32>,
    %c0_i32_8 = arith.constant 0 : i32
    %10 = arith.cmpi eq, %arg2, %c0_i32_8 : i32
    %11 = arith.extui %10 : i1 to i32
    %c0_i32_9 = arith.constant 0 : i32
    %12 = arith.cmpi ne, %11, %c0_i32_9 : i32
    scf.if %12 {
      %c0_10 = arith.constant 0 : index
      %c0_11 = arith.constant 0 : index
      %13 = vector.load %arg7[%c0_10, %c0_11] : memref<16x128xf32, #tpu.memory_space<vmem>>, vector<16x128xf32>
      %c0_12 = arith.constant 0 : index
      %c0_13 = arith.constant 0 : index
      %14 = vector.load %arg5[%c0_12, %c0_13] : memref<1x128xf32, #tpu.memory_space<vmem>>, vector<1x128xf32>
      %15 = vector.broadcast %14 : vector<1x128xf32> to vector<16x128xf32>
      %16 = arith.addf %13, %15 : vector<16x128xf32>
      %c0_14 = arith.constant 0 : index
      %c0_15 = arith.constant 0 : index
      %17 = vector.load %arg6[%c0_14, %c0_15] : memref<16x128xf32, #tpu.memory_space<vmem>>, vector<16x128xf32>
      tpu.vector_store %arg6[%c0_14, %c0_15], %16 {strides = array<i32>} : memref<16x128xf32, #tpu.memory_space<vmem>>, vector<16x128xf32>,
    } else {
    }
    return
  }
  func.func @transform_0(%arg0: i32, %arg1: i32, %arg2: i32) -> (i32, i32) {
    %c0_i32 = arith.constant 0 : i32
    return %arg0, %arg2 : i32, i32
  }
  func.func @transform_1(%arg0: i32, %arg1: i32, %arg2: i32) -> (i32, i32) {
    %c0_i32 = arith.constant 0 : i32
    return %arg2, %arg1 : i32, i32
  }
  func.func @transform_2(%arg0: i32, %arg1: i32, %arg2: i32) -> (i32, i32) {
    %c0_i32 = arith.constant 0 : i32
    %c0_i32_0 = arith.constant 0 : i32
    return %c0_i32, %arg1 : i32, i32
  }
  func.func @transform_3(%arg0: i32, %arg1: i32, %arg2: i32) -> (i32, i32) {
    %c0_i32 = arith.constant 0 : i32
    return %arg0, %arg1 : i32, i32
  }
}

</mosaic_0001>

<bundles_post_ra>
// kernel: my_transformer_ts_forward.8
= control target key start
LH: loop header
LB: loop body
LE: loop exit
PB: predicated region body
PF: predicated region fallthrough
CT: control target
= control target key end

     0   :  { %vm19_vm0 = vcmask 261120   ;;  %v131_v0 = vmov 0.0   ;;  %vm132_vm1 = vmmov 0   ;;  %s181_s1 = inlined_call_operand.vmem [shape: bf16[32,32], index: 1, kind: input, shape index: {}]   ;;  %s182_s0 = inlined_call_operand.vmem [shape: f32[16,32], index: 0, kind: input, shape index: {}]   ;;  %s183_s2 = inlined_call_operand.vmem [shape: f32[1,32], index: 2, kind: input, shape index: {}]   ;;  %s184_s3 = inlined_call_operand.vmem [shape: f32[16,32], index: 3, kind: output, shape index: {}]  }
   0x1   :  { %119 = vmatprep.subr.bf16.mxu0 %v131_v0  ;;  %v129_v1 = vld [vmem:[%s181_s1] sm:$0xff]   ;;  %123 = vmatprep.mubr.msk.bf16.mxu0 %vm132_vm1, %v131_v0  ;;  %20 = vst.msk [vmem:[#allocation2] sm:$0xff] %vm19_vm0, %v131_v0  ;;  %21 = vst.msk [vmem:[#allocation2 + $0x8] sm:$0xff] %vm19_vm0, %v131_v0  ;;  %v130_v2 = vld [vmem:[%s181_s1 + $0x8] sm:$0xff]  }
   0x2   :  { %120 = vmatpush3.bf16.msra.mxu0 %v129_v1  ;;  %v24_v3 = vld [vmem:[%s182_s0] sm:$0xff]  ;;  %v25_v4 = vld [vmem:[%s182_s0 + $0x8] sm:$0xff] }
   0x3   :  { %121 = vmatprep.subr.bf16.mxu0 %v131_v0  ;;  %v26_v5 = vpack.c.bf16 %v25_v4, %v24_v3  ;;  %v115_v14 = vld [vmem:[%s183_s2] ss:$0 sm:$0xff] }
   0x6   :  { %122 = vmatpush3.bf16.msra.mxu0 %v130_v2 }
   0x8   :  { %v22_v6 = vld [vmem:[#allocation2] sm:$0xff]  ;;  %v23_v8 = vld [vmem:[#allocation2 + $0x8] sm:$0xff] }
   0x9   :  { %124 = vmatmul.mubr.msk.bf16.vlgmr.msra.gmra.mrb[0].mxu0 %vm19_vm0, %v26_v5 }
  0xdc   :  { %v81_v7 = vpop.f32.mrb[0].mxu0 }
  0xdd   :  { %v88_v9 = vadd.f32 %v81_v7, %v22_v6  ;;  %v125_v10 = vpop.f32.mrb[1].mxu0 }
  0xde   :  { %v84_v11 = vpop.f32.mrb[2].mxu0 }
  0xdf   :  { %90 = vst.msk [vmem:[#allocation2] sm:$0xff] %vm19_vm0, %v88_v9  ;;  %v89_v12 = vadd.f32 %v84_v11, %v23_v8  ;;  %v126_v13 = vpop.f32.mrb[3].mxu0 }
  0xe1   :  { %91 = vst.msk [vmem:[#allocation2 + $0x8] sm:$0xff] %vm19_vm0, %v89_v12 }
  0xe6   :  { %v95_v15 = vld [vmem:[#allocation2] sm:$0xff] }
  0xe7   :  { %v104_v16 = vadd.f32 %v115_v14, %v95_v15 }
  0xe8   :  { %v96_v17 = vld [vmem:[#allocation2 + $0x8] sm:$0xff] }
  0xe9   :  { %106 = vst.msk [vmem:[%s184_s3] sm:$0xff] %vm19_vm0, %v104_v16  ;;  %v105_v18 = vadd.f32 %v115_v14, %v96_v17 }
  0xeb   :  { %107 = vst.msk [vmem:[%s184_s3 + $0x8] sm:$0xff] %vm19_vm0, %v105_v18 }

// kernel: my_transformer_ts_forward.10
= control target key start
LH: loop header
LB: loop body
LE: loop exit
PB: predicated region body
PF: predicated region fallthrough
CT: control target
= control target key end

     0   :  { %8 = vsyncpa [#allocation4], 0  ;;  %s1025_s0 = inlined_call_operand.vmem [shape: f32[16,32], index: 0, kind: input, shape index: {}]   ;;  %s1026_s1 = inlined_call_operand.hbm [shape: bf16[32,2048], index: 1, kind: input, shape index: {}]   ;;  %s1027_s2 = inlined_call_operand.vmem [shape: f32[1,2048], index: 2, kind: input, shape index: {}]   ;;  %s1028_s3 = inlined_call_operand.vmem [shape: bf16[16,2048], index: 3, kind: output, shape index: {}]  }
   0x1   :  { %10 = vsyncpa [#allocation4 + $0x1], 0  ;;  %s879_s12 = smov 0   ;;  %s881_s13 = smov 0  }
   0x2   :  { %s883_s14 = smov 0   ;;  %s885_s15 = smov 0  }
   0x3   :  { %s887_s16 = smov 0   ;;  %s889_s17 = smov 0  }
   0x4 LB: > { %s664_s18 = sadd.s32 4294967295, %s852_s17   ;;  %s31_s19 = sadd.s32 1, %s848_s16  ;;  %s852_s17 = sphi %s889_s17, %s16_s17   ;;  %s848_s16 = sphi %s887_s16, %s1039_s16   ;;  %s844_s15 = sphi %s885_s15, %s1038_s15   ;;  %s840_s14 = sphi %s883_s14, %s1037_s14   ;;  %s836_s13 = sphi %s881_s13, %s1036_s13   ;;  %s832_s12 = sphi %s879_s12, %s1035_s12  }
   0x5   : > { %p33_p0 = scmp.ge.s32.totalorder %s31_s19, 4  ;;  %s72_s20 = sadd.s32 1, %s840_s14 }
   0x6   : > { %p79_p1 = scmp.ne.s32.totalorder %s840_s14, %s836_s13  ;;  %p80_p2 = scmp.eq.s32.totalorder %s852_s17, 0 }
   0x7   : > { %s1041_s19 = smov (%p33_p0, %s31_s19), 0  ;;  %p85_p4 = scmp.ne.s32.totalorder %s836_s13, %s832_s12 }
   0x8   : > { %p915_p3 = por %p80_p2, %p79_p1  ;;  %s68_s22 = ssub.s32 %s848_s16, %s1041_s19 }
   0x9   : > { %p86_p5 = scmp.eq.s32.totalorder %s664_s18, 0  ;;  %p70_p6 = scmp.eq.s32.totalorder %s68_s22, 0 }
   0xa   : > { %p137_p7 = scmp.eq.s32.totalorder %s664_s18, 3  ;;  %p707_p10 = scmp.lt.s32.totalorder %s852_s17, 4 }
   0xb   : > { %p922_p8 = por %p86_p5, %p85_p4  ;;  %s175_s26 = sand.u32 1, %s840_s14  }
   0xc   : > { %s927_s24 = scalar_select %p70_p6, %s840_s14, %s72_s20  }
   0xd   : > { %p929_p9 = por %p137_p7, %p79_p1  ;;  %s695_s27 = sshll.u32 %s848_s16, 8 }
   0xe   : > { %s669_s28 = sshll.u32 %s175_s26, 6  ;;  %s939_s4 = scalar_lea.hbm %s1026_s1, %s695_s27 }
   0xf   : > { %s1031_s25 = scalar_select %p929_p9, 1, 0 }
  0x10   : > { %s179_s5 = scalar_lea.vmem [#allocation3], %s669_s28  ;;  %p943_p11 = pnand %p707_p10, %p915_p3 }
  0x11   : > { %s189_s6 = sshll.u32 %s179_s5, 4  ;;  %s950_s8 = scalar_lea.sflag [#allocation4], %s175_s26  ;;  %s947_s6 = int_to_ptr.vmem [resolvable:$true] %s189_s6 }
  0x12   : > { %s772_s9 = scalar_lea.hbm %s939_s4, 1024  ;;  %p774_p0 = pneg %p943_p11 }
  0x13   : > { %p773_p13 = scmp.ne.s32.totalorder %s939_s4, %s772_s9  ;;  %s777_s12 = scalar_lea.hbm %s1026_s1, 4096 }
  0x14   : > { %p778_p3 = scmp.lt.u32.totalorder %s939_s4, %s1026_s1  ;;  %p779_p4 = scmp.lt.u32.totalorder %s777_s12, %s772_s9 }
  0x15   : > { %p775_p1 = pnand %p774_p0, %p773_p13  ;;  %p781_p6 = scmp.lt.u32.totalorder %s772_s9, %s939_s4 }
  0x16   : > { %p780_p5 = por %p779_p4, %p778_p3 }
  0x17   : > { %p776_p2 = pneg %p775_p1 }
  0x18   : > { %p782_p7 = por %p781_p6, %p780_p5 }
  0x1a   : > { %p783_p10 = pnand %p782_p7, %p776_p2 }
  0x1c   : > { %786 = shalt.err (!%p783_p10)
}
  0x1d   : > { %s787_s21 = scalar_lea.vmem %s947_s6, 1024  ;;  %s854_s22 = smov [#allocation3]  }
  0x1e   : > { %p788_p13 = scmp.ne.s32.totalorder %s947_s6, %s787_s21  ;;  %s792_s26 = sshll.u32 %s854_s22, 4  ;;  %s793_s26 = int_to_ptr.vmem [resolvable:$false] %s792_s26 }
  0x1f   : > { %s794_s27 = scalar_lea.vmem %s793_s26, 2048  ;;  %p795_p9 = scmp.lt.s32.totalorder %s947_s6, %s793_s26 }
  0x20   : > { %p790_p1 = pnand %p788_p13, %p774_p0  ;;  %p796_p3 = scmp.lt.s32.totalorder %s794_s27, %s787_s21 }
  0x22   : > { %p791_p12 = pneg %p790_p1  ;;  %p797_p4 = por %p796_p3, %p795_p9 }
  0x24   : > { %p798_p5 = pnand %p797_p4, %p791_p12 }
  0x26   : > { %801 = shalt.err (!%p798_p5)
}
  0x27   : > { %s855_s28 = smov 1024   ;;  %s856_s29 = smov 256  }
  0x28   : > { %s857_s30 = smov 16   ;;  %p205_p0 = scmp.lt.s32.totalorder %s852_s17, 5 }
  0x29   : > { %706 = dma.hbm_to_vmem [thread:$0]  (!%p943_p11), %s939_s4, 1024, %s947_s6, %s950_s8, %s855_s28, %s856_s29, %s857_s30  }
  0x2a   : > { %p1033_p2 = scmp.ge.s32.totalorder %s852_s17, 1 }
  0x2c   : > { %p206_p6 = pnand %p1033_p2, %p205_p0 }
  0x2d   : > { %s982_s5 = sand.u32 (!%p206_p6), 1, %s836_s13  }
  0x2e   : > { %209 = sbr.rel (%p206_p6) target bundleno = 294 (0x126), region = 32  ;;  %s673_s9 = sshll.u32 (!%p206_p6), %s982_s5, 6 }
  0x2f   : > { %s212_s10 = scalar_lea.sflag (!%p206_p6), [#allocation4], %s982_s5  ;;  %s215_s11 = scalar_lea.vmem (!%p206_p6), [#allocation3], %s673_s9 }
  0x35   : > { %827 = dma.done.wait (%p922_p8), %s212_s10, 1024  }
  0x36   : > { %829 = vsyncadd (%p922_p8), %s212_s10, 4294966272  ;;  %v858_v0 = vmov 0   ;;  %v760_v1 = vld [vmem:[%s215_s11 + $0x4] ss:$16 sps:$4 sm:$0xff]   ;;  %v762_v2 = vld [vmem:[%s215_s11 + $0xc] ss:$16 sps:$4 sm:$0xff]   ;;  %v458_v12 = vlaneseq }
  0x37   : > { %375 = vmatprep.mubr.bf16.mxu0 %v858_v0  ;;  %418 = vmatprep.mubr.bf16.mxu1 %v858_v0  ;;  %v764_v3 = vld [vmem:[%s215_s11] ss:$16 sps:$4 sm:$0xff]   ;;  %v765_v4 = vld [vmem:[%s215_s11 + $0x8] ss:$16 sps:$4 sm:$0xff]   ;;  %v766_v5 = vld [vmem:[%s215_s11 + $0x24] ss:$16 sps:$4 sm:$0xff]  }
  0x38   : > { %343 = vmatprep.subr.bf16.mxu0 %v760_v1  ;;  %386 = vmatprep.subr.bf16.mxu1 %v762_v2  ;;  %v768_v6 = vld [vmem:[%s215_s11 + $0x2c] ss:$16 sps:$4 sm:$0xff]   ;;  %v770_v7 = vld [vmem:[%s215_s11 + $0x20] ss:$16 sps:$4 sm:$0xff]   ;;  %v771_v8 = vld [vmem:[%s215_s11 + $0x28] ss:$16 sps:$4 sm:$0xff]  }
  0x39   : > { %344 = vmatpush1.bf16.msra.mxu0 %v764_v3  ;;  %387 = vmatpush1.bf16.msra.mxu1 %v765_v4  ;;  %v288_v9 = vld [vmem:[%s1025_s0] sm:$0xff]  ;;  %v289_v10 = vld [vmem:[%s1025_s0 + $0x8] sm:$0xff]  ;;  %vm339_vm0 = vcmask 261120   ;;  %s675_s8 = sshll.u32 %s844_s15, 2  ;;  %v459_v13 = vshrl.u32 %v458_v12, 7  ;;  %s674_s21 = sshll.u32 %s982_s5, 5 }
  0x3a   : > { %345 = vmatprep.subr.bf16.mxu0 %v766_v5  ;;  %388 = vmatprep.subr.bf16.mxu1 %v768_v6  ;;  %v290_v11 = vpack.c.bf16 %v289_v10, %v288_v9  ;;  %p261_p8 = scmp.lt.s32.totalorder %s675_s8, 15  ;;  %s248_s22 = scalar_lea.vmem [#allocation5], %s674_s21 }
  0x3b   : > { %v460_v14 = vsub.s32 0, %v459_v13  ;;  %v468_v15 = vsub.s32 2, %v459_v13  ;;  %v464_v17 = vsub.s32 1, %v459_v13  ;;  %v472_v18 = vsub.s32 3, %v459_v13  ;;  %p1034_p9 = scmp.ne.s32.totalorder %s1031_s25, 0 }
  0x3c   : > { %s1043_s8 = smov (!%p261_p8, %s675_s8), 15  ;;  %s700_s26 = sshll.u32 (%p1034_p9), %s844_s15, 4 }
  0x3d   : > { %346 = vmatpush1.bf16.msra.mxu0 %v770_v7  ;;  %389 = vmatpush1.bf16.msra.mxu1 %v771_v8  ;;  %s263_s20 = scalar_lea.vmem %s1027_s2, %s1043_s8  ;;  %s534_s29 = scalar_lea.vmem (%p1034_p9), %s1028_s3, %s700_s26 }
  0x3e   : > { %v456_v16 = vld [vmem:[%s263_s20] sm:$0xf] }
  0x3f   : > { %v461_v19 = vrot.slane %v456_v16, %v460_v14  ;;  %v469_v20 = vrot.slane %v456_v16, %v468_v15  ;;  %v465_v21 = vrot.slane %v456_v16, %v464_v17  ;;  %v473_v22 = vrot.slane %v456_v16, %v472_v18 }
  0x40   : > { %684 = vmatmul.mubr.msk.bf16.vlgmr.msra.gmra.mrb[0].mxu0 %vm339_vm0, %v290_v11  ;;  %685 = vmatmul.mubr.msk.bf16.vlgmr.msra.gmra.mrb[0].mxu1 %vm339_vm0, %v290_v11 }
 0x113   : > { %v377_v23 = vpop.f32.mrb[0].mxu0  ;;  %v420_v24 = vpop.f32.mrb[0].mxu1 }
 0x114   : > { %v478_v25 = vadd.f32 %v461_v19, %v377_v23  ;;  %v480_v26 = vadd.f32 %v469_v20, %v420_v24  ;;  %v379_v27 = vpop.f32.mrb[1].mxu0  ;;  %v422_v28 = vpop.f32.mrb[1].mxu1 }
 0x115   : > { %v479_v29 = vadd.f32 %v465_v21, %v379_v27  ;;  %v481_v30 = vadd.f32 %v473_v22, %v422_v28  ;;  %v381_v31 = vpop.f32.mrb[2].mxu0  ;;  %v424_v32 = vpop.f32.mrb[2].mxu1 }
 0x116   : > { %v486_v33 = vmax.f32 %v478_v25, 0.0  ;;  %v488_v34 = vmax.f32 %v480_v26, 0.0  ;;  %v482_v35 = vadd.f32 %v461_v19, %v381_v31  ;;  %v484_v36 = vadd.f32 %v469_v20, %v424_v32  ;;  %v383_v37 = vpop.f32.mrb[3].mxu0  ;;  %v426_v38 = vpop.f32.mrb[3].mxu1 }
 0x117   : > { %v487_v39 = vmax.f32 %v479_v29, 0.0  ;;  %v489_v40 = vmax.f32 %v481_v30, 0.0  ;;  %v483_v41 = vadd.f32 %v465_v21, %v383_v37  ;;  %v485_v42 = vadd.f32 %v473_v22, %v426_v38  ;;  %528 = sbr.rel (!%p1034_p9) target bundleno = 294 (0x126), region = 48 }
 0x118   : > { %v490_v43 = vmax.f32 %v482_v35, 0.0  ;;  %v492_v44 = vmax.f32 %v484_v36, 0.0 }
 0x119   : > { %v696_v45 = vpack.c.bf16 %v487_v39, %v486_v33  ;;  %v697_v46 = vpack.c.bf16 %v489_v40, %v488_v34  ;;  %v491_v47 = vmax.f32 %v483_v41, 0.0  ;;  %v493_v48 = vmax.f32 %v485_v42, 0.0 }
 0x11b   : > { %518 = vst [vmem:[%s248_s22] sm:$0xff] %v696_v45  ;;  %519 = vst [vmem:[%s248_s22 + $0x8] sm:$0xff] %v697_v46  ;;  %v698_v49 = vpack.c.bf16 %v491_v47, %v490_v43  ;;  %v699_v50 = vpack.c.bf16 %v493_v48, %v492_v44 }
 0x11d   : > { %520 = vst [vmem:[%s248_s22 + $0x10] sm:$0xff] %v698_v49  ;;  %521 = vst [vmem:[%s248_s22 + $0x18] sm:$0xff] %v699_v50 }
 0x122   : > { %v547_v51 = vld [vmem:[%s248_s22] sm:$0xff]  ;;  %v549_v52 = vld [vmem:[%s248_s22 + $0x8] sm:$0xff] }
 0x123   : > { %548 = vst [vmem:[%s534_s29] sm:$0xff] %v547_v51  ;;  %550 = vst [vmem:[%s534_s29 + $0x8] sm:$0xff] %v549_v52 }
 0x124   : > { %v551_v53 = vld [vmem:[%s248_s22 + $0x10] sm:$0xff]  ;;  %v553_v54 = vld [vmem:[%s248_s22 + $0x18] sm:$0xff] }
 0x125   : > { %552 = vst [vmem:[%s534_s29 + $0x40] sm:$0xff] %v551_v53  ;;  %554 = vst [vmem:[%s534_s29 + $0x48] sm:$0xff] %v553_v54 }
 0x126 PF: > { %s16_s17 = sadd.s32 1, %s852_s17   ;;  %s1035_s12 = smov %s836_s13 }
 0x127   : > { %p13_p11 = scmp.ge.s32.totalorder %s16_s17, 6   ;;  %s1036_s13 = smov %s840_s14 }
 0x128   : > { %s1037_s14 = smov %s927_s24  ;;  %s1038_s15 = smov %s848_s16 }
 0x129   : > { %s1039_s16 = smov %s1041_s19  ;;  %15 = sbr.rel (!%p13_p11) target bundleno = 4 (0x4), region = 109 }
 0x130   :  { %570 = vsyncpa [#allocation4], 1 }
 0x131   :  { %572 = vsyncpa [#allocation4 + $0x1], 1 }

// kernel: my_transformer_ts_forward.9
= control target key start
LH: loop header
LB: loop body
LE: loop exit
PB: predicated region body
PF: predicated region fallthrough
CT: control target
= control target key end

     0   :  { %s1184_s24 = smov 0   ;;  %s1309_s0 = inlined_call_operand.vmem [shape: f32[16,32], index: 0, kind: input, shape index: {}]   ;;  %s1310_s1 = inlined_call_operand.vmem [shape: bf16[32,96], index: 1, kind: input, shape index: {}]   ;;  %s1311_s2 = inlined_call_operand.vmem [shape: f32[1,96], index: 2, kind: input, shape index: {}]   ;;  %s1312_s3 = inlined_call_operand.vmem [shape: bf16[32,32], index: 3, kind: input, shape index: {}]   ;;  %s1313_s4 = inlined_call_operand.vmem [shape: f32[1,32], index: 4, kind: input, shape index: {}]   ;;  %s1314_s5 = inlined_call_operand.vmem [shape: f32[1,32], index: 5, kind: input, shape index: {}]   ;;  %s1315_s6 = inlined_call_operand.vmem [shape: f32[1,32], index: 6, kind: input, shape index: {}]   ;;  %s1316_s7 = inlined_call_operand.vmem [shape: f32[16,32], index: 7, kind: output, shape index: {}]  }
   0x1 LB: > { %s961_s25 = sadd.s32 4294967295, %s1126_s24   ;;  %p965_p0 = scmp.ge.s32.totalorder %s1126_s24, 1  ;;  %s1126_s24 = sphi %s1184_s24, %s17_s24  }
   0x2   : > { %p236_p1 = scmp.lt.s32.totalorder %s1126_s24, 3 }
   0x4   : > { %p237_p2 = pnand %p965_p0, %p236_p1 }
   0x5   : > { %v1098_v0 = vld [vmem:[%s1310_s1] sm:$0xff] (!%p237_p2)   ;;  %v1128_v1 = vmov (!%p237_p2), 0.0   ;;  %v1099_v2 = vld [vmem:[%s1310_s1 + $0x8] sm:$0xff] (!%p237_p2)   ;;  %vm1129_vm0 = vmmov (!%p237_p2), 0   ;;  %p266_p3 = scmp.lt.s32.totalorder (!%p237_p2), %s961_s25, 1  ;;  %vm300_vm1 = vcmask (!%p237_p2), 261120  }
   0x6   : > { %240 = sbr.rel (%p237_p2) target bundleno = 1815 (0x717), region = 48  ;;  %1010 = vmatprep.subr.bf16.mxu0 (!%p237_p2), %v1128_v1  ;;  %1018 = vmatprep.subr.bf16.mxu1 (!%p237_p2), %v1128_v1  ;;  %v968_v5 = vld [vmem:[%s1311_s2] ss:$0 sm:$0xff] (!%p237_p2)  ;;  %s1130_s13 = smov (!%p237_p2), 96   ;;  %vm350_vm2 = vcmask (!%p237_p2), 64512   ;;  %vm414_vm3 = vcmask (!%p237_p2), 1043456  }
   0x7   : > { %1011 = vmatpush3.bf16.msra.mxu0 (!%p237_p2), %v1098_v0  ;;  %1014 = vmatprep.mubr.msk.bf16.mxu0 (!%p237_p2), %vm1129_vm0, %v1128_v1  ;;  %s1131_s14 = smov (!%p237_p2), 120   ;;  %s1132_s15 = smov (!%p237_p2), 88   ;;  %vm574_vm4 = vcmask (!%p237_p2), 130112   ;;  %vm690_vm5 = vcmask (!%p237_p2), 195712   ;;  %vm806_vm6 = vcmask (!%p237_p2), 261312  }
   0x8   : > { %1012 = vmatprep.subr.bf16.mxu0 (!%p237_p2), %v1128_v1  ;;  %1020 = vmatprep.mubr.msk.bf16.mxu1 (!%p237_p2), %vm1129_vm0, %v1128_v1  ;;  %s1133_s16 = smov (!%p237_p2), 80   ;;  %s1134_s17 = smov (!%p237_p2), 112  }
   0x9   : > { %s1135_s18 = smov (!%p237_p2), 72   ;;  %s1136_s19 = smov (!%p237_p2), 104  }
   0xa   : > { %s1137_s20 = smov (!%p237_p2), 56   ;;  %s1138_s21 = smov (!%p237_p2), 64  }
   0xb   : > { %1013 = vmatpush3.bf16.msra.mxu0 (!%p237_p2), %v1099_v2  ;;  %s1139_s22 = smov (!%p237_p2), 40   ;;  %s1140_s23 = smov (!%p237_p2), 48  }
   0xc   : > { %1024 = vmatprep.subr.bf16.mxu0 (!%p237_p2), %v1128_v1  ;;  %s1141_s26 = smov (!%p237_p2), 8   ;;  %s1142_s9 = smov (!%p237_p2), 16  }
   0xd   : > { %s1318_s25 = smov (!%p266_p3, %s961_s25), 1 }
   0xe   : > { %s966_s30 = sshll.u32 %s1318_s25, 3 }
   0xf   : > { %s269_s10 = scalar_lea.vmem %s1309_s0, %s966_s30 }
  0x10   : > { %v1214_v3 = vld [vmem:[%s269_s10] sm:$0xff]  ;;  %s1143_s10 = smov 24  }
  0x11   : > { %v276_v4 = vpack.c.bf16 %v1214_v3, %v1214_v3 }
  0x13   : > { %1015 = vmatmul.mubr.msk.bf16.vlgmr.msra.gmra.mrb[0].mxu0 %vm300_vm1, %v276_v4 }
  0x14   : > { %1026 = vmatprep.mubr.msk.bf16.mxu0 %vm1129_vm0, %v1128_v1 }
  0xe6   : > { %v338_v6 = vpop.f32.mrb[0].mxu0 }
  0xe7   : > { %v339_v7 = vadd.f32 %v968_v5, %v338_v6  ;;  %v1016_v8 = vpop.f32.mrb[1].mxu0 }
  0xe8   : > { %v341_v9 = vpop.f32.mrb[2].mxu0 }
  0xe9   : > { %v344_v10 = vmul.f32 0.35355338, %v339_v7  ;;  %v1224_v11 = vpack.c.bf16 %v339_v7, %v339_v7  ;;  %v1017_v12 = vpop.f32.mrb[3].mxu0 }
  0xeb   : > { %v345_v13 = vpack.c.bf16 %v344_v10, %v344_v10  ;;  %348 = vrot.lane.b32.xlu0 %v1224_v11, %s1130_s13 }
  0xed   : > { %460 = vrot.lane.b32.xlu1 %v345_v13, %s1131_s14 }
  0xef   : > { %462 = vrot.lane.b32.xlu0 %v1224_v11, %s1132_s15 }
  0xf1   : > { %578 = vrot.lane.b32.xlu1 %v1224_v11, %s1133_s16 }
  0xf3   : > { %576 = vrot.lane.b32.xlu0 %v345_v13, %s1134_s17 }
  0xf5   : > { %694 = vrot.lane.b32.xlu1 %v1224_v11, %s1135_s18 }
  0xf7   : > { %692 = vrot.lane.b32.xlu0 %v345_v13, %s1136_s19  ;;  %s273_s19 = scalar_lea.vmem %s1316_s7, %s966_s30 }
 0x15d   : > { %v349_v14 = vpop.permute.xlu0 %348 }
 0x15e   : > { %v355_v15 = vsel %vm350_vm2, %v349_v14, 0 }
 0x15f   : > { %1019 = vmatpush3.bf16.xpose.msra.mxu1 %v355_v15  ;;  %v461_v17 = vpop.permute.xlu1 %460 }
 0x160   : > { %1030 = vmatprep.subr.bf16.mxu1 %v1128_v1 }
 0x161   : > { %v463_v16 = vpop.permute.xlu0 %462 }
 0x162   : > { %v468_v18 = vsel %vm350_vm2, %v463_v16, 0 }
 0x163   : > { %v579_v19 = vpop.permute.xlu1 %578 }
 0x164   : > { %v584_v20 = vsel %vm350_vm2, %v579_v19, 0 }
 0x165   : > { %v577_v22 = vpop.permute.xlu0 %576 }
 0x166   : > { %1021 = vmatmul.mubr.msk.bf16.vlgmr.msra.gmra.mrb[0].mxu1 %vm350_vm2, %v345_v13 }
 0x167   : > { %1031 = vmatpush3.bf16.xpose.msra.mxu1 %v468_v18  ;;  %1032 = vmatprep.mubr.msk.bf16.mxu1 %vm1129_vm0, %v1128_v1  ;;  %v695_v21 = vpop.permute.xlu1 %694 }
 0x168   : > { %1042 = vmatprep.subr.bf16.mxu1 %v1128_v1  ;;  %v700_v23 = vsel %vm350_vm2, %v695_v21, 0 }
 0x169   : > { %v693_v24 = vpop.permute.xlu0 %692 }
 0x16e   : > { %1033 = vmatmul.mubr.msk.bf16.vlgmr.msra.gmra.mrb[4].mxu1 %vm350_vm2, %v461_v17 }
 0x16f   : > { %1043 = vmatpush3.bf16.xpose.msra.mxu1 %v584_v20  ;;  %1044 = vmatprep.mubr.msk.bf16.mxu1 %vm1129_vm0, %v1128_v1 }
 0x170   : > { %1054 = vmatprep.subr.bf16.mxu1 %v1128_v1 }
 0x176   : > { %1045 = vmatmul.mubr.msk.bf16.vlgmr.msra.gmra.mrb[8].mxu1 %vm350_vm2, %v577_v22 }
 0x177   : > { %1055 = vmatpush3.bf16.xpose.msra.mxu1 %v700_v23  ;;  %1056 = vmatprep.mubr.msk.bf16.mxu1 %vm1129_vm0, %v1128_v1 }
 0x178   : > { %1066 = vmatprep.subr.bf16.mxu1 %v1128_v1 }
 0x17e   : > { %1057 = vmatmul.mubr.msk.bf16.vlgmr.msra.gmra.mrb[12].mxu1 %vm350_vm2, %v693_v24 }
 0x17f   : > { %1070 = vmatprep.mubr.msk.bf16.mxu1 %vm1129_vm0, %v1128_v1 }
 0x239   : > { %v391_v25 = vpop.f32.mrb[0].mxu1 }
 0x23a   : > { %v1022_v26 = vpop.f32.mrb[1].mxu1  ;;  %v397_v27 = vsel %vm350_vm2, %v391_v25, -inf }
 0x23b   : > { %398 = vmax.xlane.f32.xlu1 %v397_v27  ;;  %v394_v28 = vpop.f32.mrb[2].mxu1 }
 0x23c   : > { %v1023_v29 = vpop.f32.mrb[3].mxu1 }
 0x241   : > { %v504_v30 = vpop.f32.mrb[4].mxu1 }
 0x242   : > { %v1034_v31 = vpop.f32.mrb[5].mxu1  ;;  %v510_v32 = vsel %vm350_vm2, %v504_v30, -inf }
 0x243   : > { %511 = vmax.xlane.f32.xlu0 %v510_v32  ;;  %v507_v33 = vpop.f32.mrb[6].mxu1 }
 0x244   : > { %v1035_v34 = vpop.f32.mrb[7].mxu1 }
 0x249   : > { %v620_v35 = vpop.f32.mrb[8].mxu1 }
 0x24a   : > { %v1046_v36 = vpop.f32.mrb[9].mxu1  ;;  %v626_v37 = vsel %vm350_vm2, %v620_v35, -inf }
 0x24b   : > { %627 = vmax.xlane.f32.xlu0 %v626_v37  ;;  %v623_v38 = vpop.f32.mrb[10].mxu1  ;;  %v1101_v36 = vld [vmem:[%s1312_s3 + $0x8] sm:$0xff]  }
 0x24c   : > { %v1047_v39 = vpop.f32.mrb[11].mxu1 }
 0x251   : > { %v736_v40 = vpop.f32.mrb[12].mxu1 }
 0x252   : > { %v1058_v41 = vpop.f32.mrb[13].mxu1  ;;  %v742_v42 = vsel %vm350_vm2, %v736_v40, -inf }
 0x253   : > { %743 = vmax.xlane.f32.xlu1 %v742_v42  ;;  %v739_v43 = vpop.f32.mrb[14].mxu1 }
 0x254   : > { %v1059_v44 = vpop.f32.mrb[15].mxu1 }
 0x2c8   : > { %v399_v45 = vpop.xlane.xlu1 %398 }
 0x2c9   : > { %v400_v46 = vsub.f32 %v391_v25, %v399_v45 }
 0x2cb   : > { %v401_v47 = vmul.f32 1.442695, %v400_v46 }
 0x2cd   : > { %1102 = vpow2.f32 %v401_v47 }
 0x2d0   : > { %v512_v48 = vpop.xlane.xlu0 %511 }
 0x2d1   : > { %v513_v49 = vsub.f32 %v504_v30, %v512_v48 }
 0x2d3   : > { %v514_v50 = vmul.f32 1.442695, %v513_v49  ;;  %v980_v49 = vld [vmem:[%s1313_s4] ss:$0 sm:$0xff] }
 0x2d5   : > { %1104 = vpow2.f32 %v514_v50 }
 0x2d7   : > { %v1103_v51 = vpop.eup %1102 }
 0x2d8   : > { %v628_v52 = vpop.xlane.xlu0 %627  ;;  %v403_v53 = vsel %vm350_vm2, %v1103_v51, 0.0 }
 0x2d9   : > { %v629_v54 = vsub.f32 %v620_v35, %v628_v52  ;;  %404 = vadd.xlane.f32.xlu0 %v403_v53  ;;  %v1100_v35 = vld [vmem:[%s1312_s3] sm:$0xff]  }
 0x2da   : > { %1067 = vmatpush3.bf16.msra.mxu1 %v1100_v35 }
 0x2db   : > { %v630_v55 = vmul.f32 1.442695, %v629_v54  ;;  %1068 = vmatprep.subr.bf16.mxu1 %v1128_v1 }
 0x2dd   : > { %1106 = vpow2.f32 %v630_v55 }
 0x2de   : > { %1069 = vmatpush3.bf16.msra.mxu1 %v1101_v36 }
 0x2df   : > { %v1105_v56 = vpop.eup %1104 }
 0x2e0   : > { %v516_v57 = vsel %vm350_vm2, %v1105_v56, 0.0  ;;  %v744_v60 = vpop.xlane.xlu1 %743 }
 0x2e1   : > { %517 = vadd.xlane.f32.xlu1 %v516_v57  ;;  %v745_v61 = vsub.f32 %v736_v40, %v744_v60 }
 0x2e3   : > { %v746_v62 = vmul.f32 1.442695, %v745_v61 }
 0x2e5   : > { %1108 = vpow2.f32 %v746_v62 }
 0x2e7   : > { %v1107_v58 = vpop.eup %1106 }
 0x2e8   : > { %v632_v59 = vsel %vm350_vm2, %v1107_v58, 0.0 }
 0x2e9   : > { %633 = vadd.xlane.f32.xlu0 %v632_v59 }
 0x2ef   : > { %v1109_v63 = vpop.eup %1108 }
 0x2f0   : > { %v748_v0 = vsel %vm350_vm2, %v1109_v63, 0.0 }
 0x2f2   : > { %522 = vrot.lane.b32.xlu1 %v1224_v11, %s1137_s20 }
 0x2ff   : > { %409 = vrot.lane.b32.xlu0 %v1224_v11, %s1138_s21 }
 0x303   : > { %754 = vrot.lane.b32.xlu0 %v1224_v11, %s1139_s22 }
 0x316   : > { %749 = vadd.xlane.f32.xlu1 %v748_v0 }
 0x327   : > { %638 = vrot.lane.b32.xlu1 %v1224_v11, %s1140_s23 }
 0x366   : > { %v405_v2 = vpop.xlane.xlu0 %404 }
 0x367   : > { %1110 = vrcp.f32 %v405_v2 }
 0x36e   : > { %v518_v4 = vpop.xlane.xlu1 %517 }
 0x36f   : > { %1112 = vrcp.f32 %v518_v4 }
 0x371   : > { %v1111_v5 = vpop.eup %1110 }
 0x372   : > { %v407_v7 = vmul.f32 %v1111_v5, %v1103_v51  ;;  %v523_v10 = vpop.permute.xlu1 %522  ;;  %v985_v5 = vld [vmem:[%s1315_s6] ss:$0 sm:$0xff] }
 0x373   : > { %v528_v14 = vsel %vm414_vm3, %v523_v10, 0 }
 0x374   : > { %v408_v12 = vpack.c.bf16 %v407_v7, %v407_v7 }
 0x376   : > { %v634_v6 = vpop.xlane.xlu0 %633 }
 0x377   : > { %1114 = vrcp.f32 %v634_v6 }
 0x379   : > { %v1113_v13 = vpop.eup %1112 }
 0x37a   : > { %v410_v8 = vpop.permute.xlu0 %409  ;;  %v520_v11 = vmul.f32 %v1113_v13, %v1105_v56 }
 0x37b   : > { %v416_v9 = vsel %vm414_vm3, %v410_v8, 0 }
 0x37c   : > { %1025 = vmatpush3.bf16.msra.mxu0 %v416_v9  ;;  %v521_v15 = vpack.c.bf16 %v520_v11, %v520_v11 }
 0x37d   : > { %1036 = vmatprep.subr.bf16.mxu0 %v1128_v1 }
 0x37e   : > { %v755_v21 = vpop.permute.xlu0 %754 }
 0x37f   : > { %1027 = vmatmul.mubr.msk.bf16.vlgmr.msra.gmra.mrb[4].mxu0 %vm350_vm2, %v408_v12  ;;  %v760_v23 = vsel %vm414_vm3, %v755_v21, 0 }
 0x380   : > { %1037 = vmatpush3.bf16.msra.mxu0 %v528_v14  ;;  %1038 = vmatprep.mubr.msk.bf16.mxu0 %vm1129_vm0, %v1128_v1 }
 0x381   : > { %1048 = vmatprep.subr.bf16.mxu0 %v1128_v1  ;;  %v1115_v16 = vpop.eup %1114 }
 0x382   : > { %v636_v18 = vmul.f32 %v1115_v16, %v1107_v58 }
 0x384   : > { %v637_v22 = vpack.c.bf16 %v636_v18, %v636_v18 }
 0x387   : > { %1039 = vmatmul.mubr.msk.bf16.vlgmr.msra.gmra.mrb[8].mxu0 %vm350_vm2, %v521_v15 }
 0x388   : > { %1050 = vmatprep.mubr.msk.bf16.mxu0 %vm1129_vm0, %v1128_v1 }
 0x3a3   : > { %v750_v17 = vpop.xlane.xlu1 %749 }
 0x3a4   : > { %1116 = vrcp.f32 %v750_v17 }
 0x3a7   : > { %v639_v19 = vpop.permute.xlu1 %638 }
 0x3a8   : > { %v644_v20 = vsel %vm414_vm3, %v639_v19, 0 }
 0x3a9   : > { %1049 = vmatpush3.bf16.msra.mxu0 %v644_v20 }
 0x3aa   : > { %1060 = vmatprep.subr.bf16.mxu0 %v1128_v1 }
 0x3ac   : > { %1051 = vmatmul.mubr.msk.bf16.vlgmr.msra.gmra.mrb[12].mxu0 %vm350_vm2, %v637_v22 }
 0x3ad   : > { %1061 = vmatpush3.bf16.msra.mxu0 %v760_v23  ;;  %1062 = vmatprep.mubr.msk.bf16.mxu0 %vm1129_vm0, %v1128_v1 }
 0x3ae   : > { %v1117_v24 = vpop.eup %1116 }
 0x3af   : > { %v752_v25 = vmul.f32 %v1117_v24, %v1109_v63 }
 0x3b1   : > { %v753_v26 = vpack.c.bf16 %v752_v25, %v752_v25 }
 0x3b4   : > { %1063 = vmatmul.mubr.msk.bf16.vlgmr.msra.gmra.mrb[16].mxu0 %vm350_vm2, %v753_v26 }
 0x452   : > { %v452_v27 = vpop.f32.mrb[4].mxu0 }
 0x453   : > { %458 = vst.msk [vmem:[#allocation2] sm:$0xff] %vm350_vm2, %v452_v27  ;;  %v1028_v28 = vpop.f32.mrb[5].mxu0 }
 0x454   : > { %v455_v29 = vpop.f32.mrb[6].mxu0 }
 0x455   : > { %v1029_v30 = vpop.f32.mrb[7].mxu0 }
 0x45a   : > { %v564_v31 = vpop.f32.mrb[8].mxu0 }
 0x45b   : > { %571 = vrot.lane.b32.xlu1 %v564_v31, %s1141_s26  ;;  %v1040_v32 = vpop.f32.mrb[9].mxu0 }
 0x45c   : > { %v567_v33 = vpop.f32.mrb[10].mxu0 }
 0x45d   : > { %v1041_v34 = vpop.f32.mrb[11].mxu0 }
 0x47f   : > { %v680_v37 = vpop.f32.mrb[12].mxu0 }
 0x480   : > { %687 = vrot.lane.b32.xlu0 %v680_v37, %s1142_s9  ;;  %v1052_v38 = vpop.f32.mrb[13].mxu0 }
 0x481   : > { %v683_v39 = vpop.f32.mrb[14].mxu0 }
 0x482   : > { %v1053_v40 = vpop.f32.mrb[15].mxu0 }
 0x487   : > { %v796_v41 = vpop.f32.mrb[16].mxu0 }
 0x488   : > { %803 = vrot.lane.b32.xlu1 %v796_v41, %s1143_s10  ;;  %v1064_v42 = vpop.f32.mrb[17].mxu0 }
 0x489   : > { %v799_v43 = vpop.f32.mrb[18].mxu0 }
 0x48a   : > { %v1065_v44 = vpop.f32.mrb[19].mxu0 }
 0x4cd   : > { %v572_v45 = vpop.permute.xlu1 %571 }
 0x4ce   : > { %575 = vst.msk [vmem:[#allocation2] sm:$0xff] %vm574_vm4, %v572_v45 }
 0x4f2   : > { %v688_v46 = vpop.permute.xlu0 %687 }
 0x4f3   : > { %691 = vst.msk [vmem:[#allocation2] sm:$0xff] %vm690_vm5, %v688_v46 }
 0x4fa   : > { %v804_v1 = vpop.permute.xlu1 %803 }
 0x4fb   : > { %807 = vst.msk [vmem:[#allocation2] sm:$0xff] %vm806_vm6, %v804_v1 }
 0x502   : > { %v808_v47 = vld [vmem:[#allocation2] sm:$0xff] }
 0x503   : > { %v809_v48 = vpack.c.bf16 %v808_v47, %v808_v47 }
 0x505   : > { %1071 = vmatmul.mubr.msk.bf16.vlgmr.msra.gmra.mrb[16].mxu1 %vm300_vm1, %v809_v48 }
 0x5d8   : > { %v870_v50 = vpop.f32.mrb[16].mxu1 }
 0x5d9   : > { %v871_v51 = vadd.f32 %v980_v49, %v870_v50  ;;  %v1072_v52 = vpop.f32.mrb[17].mxu1 }
 0x5da   : > { %v873_v53 = vpop.f32.mrb[18].mxu1 }
 0x5db   : > { %v1073_v54 = vpop.f32.mrb[19].mxu1  ;;  %v876_v55 = vadd.f32 %v871_v51, %v1214_v3  ;;  %v984_v3 = vld [vmem:[%s1314_s5] ss:$0 sm:$0xff] }
 0x5dd   : > { %v877_v56 = vsel %vm300_vm1, %v876_v55, 0.0 }
 0x5de   : > { %878 = vadd.xlane.f32.xlu0 %v877_v56 }
 0x66b   : > { %v879_v57 = vpop.xlane.xlu0 %878 }
 0x66c   : > { %v881_v58 = vmul.f32 0.03125, %v879_v57 }
 0x66e   : > { %v882_v59 = vsub.f32 %v876_v55, %v881_v58 }
 0x670   : > { %v883_v60 = vmul.f32 %v882_v59, %v882_v59 }
 0x672   : > { %v884_v61 = vsel %vm300_vm1, %v883_v60, 0.0 }
 0x673   : > { %885 = vadd.xlane.f32.xlu1 %v884_v61 }
 0x700   : > { %v886_v62 = vpop.xlane.xlu1 %885 }
 0x701   : > { %v887_v63 = vmul.f32 0.03125, %v886_v62 }
 0x703   : > { %v888_v0 = vadd.f32 1e-05, %v887_v63 }
 0x705   : > { %1118 = vrsqrt.f32 %v888_v0 }
 0x70f   : > { %v1119_v2 = vpop.eup %1118 }
 0x710   : > { %v890_v4 = vmul.f32 %v1119_v2, %v882_v59 }
 0x712   : > { %v898_v6 = vmul.f32 %v984_v3, %v890_v4 }
 0x714   : > { %v906_v7 = vadd.f32 %v985_v5, %v898_v6 }
 0x716   : > { %907 = vst.msk [vmem:[%s273_s19] sm:$0xff] %vm300_vm1, %v906_v7 }
 0x717 PF: > { %s17_s24 = sadd.s32 1, %s1126_s24  }
 0x718   : > { %p14_p4 = scmp.ge.s32.totalorder %s17_s24, 4  }
 0x71a   :  { %16 = sbr.rel (!%p14_p4) target bundleno = 1 (0x1), region = 78 }

// kernel: my_transformer_ts_forward.13
= control target key start
LH: loop header
LB: loop body
LE: loop exit
PB: predicated region body
PF: predicated region fallthrough
CT: control target
= control target key end

     0   :  { %s824_s12 = smov 0   ;;  %s826_s13 = smov 0   ;;  %s910_s0 = inlined_call_operand.vmem [shape: f32[16,32], index: 0, kind: input, shape index: {}]   ;;  %s911_s1 = inlined_call_operand.vmem [shape: bf16[32,2048], index: 1, kind: input, shape index: {}]   ;;  %s912_s2 = inlined_call_operand.vmem [shape: f32[1,2048], index: 2, kind: input, shape index: {}]   ;;  %s913_s3 = inlined_call_operand.vmem [shape: bf16[16,2048], index: 3, kind: output, shape index: {}]  }
   0x1   :  { %s828_s14 = smov 0   ;;  %s830_s15 = smov 0  }
   0x2   :  { %s832_s16 = smov 0  }
   0x3 LB: > { %s28_s17 = sadd.s32 1, %s797_s15  ;;  %s673_s18 = sadd.s32 4294967295, %s801_s16   ;;  %s801_s16 = sphi %s832_s16, %s13_s16   ;;  %s797_s15 = sphi %s830_s15, %s918_s15   ;;  %s793_s14 = sphi %s828_s14, %s917_s14   ;;  %s789_s13 = sphi %s826_s13, %s916_s13   ;;  %s785_s12 = sphi %s824_s12, %s915_s12  }
   0x4   : > { %p30_p0 = scmp.ge.s32.totalorder %s28_s17, 4  ;;  %p76_p1 = scmp.ne.s32.totalorder %s789_s13, %s785_s12 }
   0x5   : > { %p77_p2 = scmp.eq.s32.totalorder %s801_s16, 0  ;;  %p134_p4 = scmp.eq.s32.totalorder %s673_s18, 3 }
   0x6   : > { %s920_s17 = smov (%p30_p0, %s28_s17), 0  ;;  %s69_s20 = sadd.s32 1, %s789_s13 }
   0x7   : > { %p78_p3 = por %p77_p2, %p76_p1  ;;  %s65_s19 = ssub.s32 %s797_s15, %s920_s17 }
   0x8   : > { %p67_p5 = scmp.eq.s32.totalorder %s65_s19, 0  ;;  %p859_p6 = por %p134_p4, %p76_p1 }
   0x9   : > { %p677_p7 = scmp.ge.s32.totalorder %s801_s16, 4 }
   0xa   : > { %s864_s22 = scalar_select %p67_p5, %s789_s13, %s69_s20  }
   0xb   : > { %168 = sbr.rel (%p677_p7) target bundleno = 26 (0x1a), region = 20 }
  0x12   : > { %171 = sbr.rel (!%p78_p3) target bundleno = 26 (0x1a), region = 24  ;;  %s173_s23 = sand.u32 (%p78_p3), 1, %s789_s13  }
  0x13   : > { %s704_s24 = sshll.u32 (%p78_p3), %s797_s15, 4  ;;  %s678_s25 = sshll.u32 (%p78_p3), %s173_s23, 6 }
  0x14   : > { %s181_s28 = scalar_lea.vmem (%p78_p3), %s911_s1, %s704_s24  ;;  %s175_s29 = scalar_lea.vmem (%p78_p3), [#allocation3], %s678_s25 }
  0x15   : > { %v194_v0 = vld [vmem:[%s181_s28] sm:$0xff] (%p78_p3)  ;;  %v196_v1 = vld [vmem:[%s181_s28 + $0x8] sm:$0xff] (%p78_p3) }
  0x16   : > { %v198_v2 = vld [vmem:[%s181_s28 + $0x40] sm:$0xff] (%p78_p3)  ;;  %195 = vst [vmem:[%s175_s29] sm:$0xff] (%p78_p3), %v194_v0  ;;  %197 = vst [vmem:[%s175_s29 + $0x8] sm:$0xff] (%p78_p3), %v196_v1  ;;  %v200_v3 = vld [vmem:[%s181_s28 + $0x48] sm:$0xff] (%p78_p3) }
  0x17   : > { %199 = vst [vmem:[%s175_s29 + $0x10] sm:$0xff] (%p78_p3), %v198_v2  ;;  %v202_v4 = vld [vmem:[%s181_s28 + $0x80] sm:$0xff] (%p78_p3)  ;;  %v204_v5 = vld [vmem:[%s181_s28 + $0x88] sm:$0xff] (%p78_p3)  ;;  %201 = vst [vmem:[%s175_s29 + $0x18] sm:$0xff] (%p78_p3), %v200_v3 }
  0x18   : > { %203 = vst [vmem:[%s175_s29 + $0x20] sm:$0xff] (%p78_p3), %v202_v4  ;;  %205 = vst [vmem:[%s175_s29 + $0x28] sm:$0xff] (%p78_p3), %v204_v5  ;;  %v206_v6 = vld [vmem:[%s181_s28 + $0xc0] sm:$0xff] (%p78_p3)  ;;  %v208_v7 = vld [vmem:[%s181_s28 + $0xc8] sm:$0xff] (%p78_p3) }
  0x19   : > { %207 = vst [vmem:[%s175_s29 + $0x30] sm:$0xff] %v206_v6  ;;  %209 = vst [vmem:[%s175_s29 + $0x38] sm:$0xff] %v208_v7 }
  0x1a PF: > { %p681_p8 = scmp.ge.s32.totalorder %s801_s16, 1  ;;  %p222_p9 = scmp.lt.s32.totalorder %s801_s16, 5 }
  0x1c   : > { %p223_p10 = pnand %p681_p8, %p222_p9 }
  0x1d   : > { %s229_s30 = sand.u32 (!%p223_p10), 1, %s785_s12   ;;  %v803_v8 = vmov (!%p223_p10), 0   ;;  %v302_v13 = vld [vmem:[%s910_s0] sm:$0xff] (!%p223_p10)  ;;  %v303_v14 = vld [vmem:[%s910_s0 + $0x8] sm:$0xff] (!%p223_p10)  ;;  %vm353_vm0 = vcmask (!%p223_p10), 261120   ;;  %s684_s10 = sshll.u32 (!%p223_p10), %s793_s14, 2  ;;  %v472_v20 = vlaneseq (!%p223_p10) }
  0x1e   : > { %226 = sbr.rel (%p223_p10) target bundleno = 271 (0x10f), region = 51  ;;  %s682_s4 = sshll.u32 (!%p223_p10), %s229_s30, 6  ;;  %389 = vmatprep.mubr.bf16.mxu0 (!%p223_p10), %v803_v8  ;;  %432 = vmatprep.mubr.bf16.mxu1 (!%p223_p10), %v803_v8  ;;  %v304_v19 = vpack.c.bf16 (!%p223_p10), %v303_v14, %v302_v13 }
  0x1f   : > { %s231_s5 = scalar_lea.vmem (!%p223_p10), [#allocation3], %s682_s4  ;;  %p275_p11 = scmp.lt.s32.totalorder (!%p223_p10), %s684_s10, 15  ;;  %v473_v21 = vshrl.u32 (!%p223_p10), %v472_v20, 7 }
  0x20   : > { %v751_v9 = vld [vmem:[%s231_s5 + $0x4] ss:$16 sps:$4 sm:$0xff] (!%p223_p10)   ;;  %v753_v10 = vld [vmem:[%s231_s5 + $0xc] ss:$16 sps:$4 sm:$0xff] (!%p223_p10)   ;;  %v755_v11 = vld [vmem:[%s231_s5] ss:$16 sps:$4 sm:$0xff] (!%p223_p10)  }
  0x21   : > { %357 = vmatprep.subr.bf16.mxu0 (!%p223_p10), %v751_v9  ;;  %v756_v12 = vld [vmem:[%s231_s5 + $0x8] ss:$16 sps:$4 sm:$0xff] (!%p223_p10)   ;;  %400 = vmatprep.subr.bf16.mxu1 (!%p223_p10), %v753_v10  ;;  %v757_v15 = vld [vmem:[%s231_s5 + $0x24] ss:$16 sps:$4 sm:$0xff] (!%p223_p10)   ;;  %v759_v16 = vld [vmem:[%s231_s5 + $0x2c] ss:$16 sps:$4 sm:$0xff] (!%p223_p10)  }
  0x22   : > { %358 = vmatpush1.bf16.msra.mxu0 (!%p223_p10), %v755_v11  ;;  %401 = vmatpush1.bf16.msra.mxu1 (!%p223_p10), %v756_v12  ;;  %v761_v17 = vld [vmem:[%s231_s5 + $0x20] ss:$16 sps:$4 sm:$0xff] (!%p223_p10)   ;;  %v762_v18 = vld [vmem:[%s231_s5 + $0x28] ss:$16 sps:$4 sm:$0xff] (!%p223_p10)   ;;  %v474_v22 = vsub.s32 (!%p223_p10), 0, %v473_v21  ;;  %v482_v23 = vsub.s32 (!%p223_p10), 2, %v473_v21 }
  0x23   : > { %359 = vmatprep.subr.bf16.mxu0 (!%p223_p10), %v757_v15  ;;  %402 = vmatprep.subr.bf16.mxu1 (!%p223_p10), %v759_v16  ;;  %v478_v25 = vsub.s32 (!%p223_p10), 1, %v473_v21  ;;  %v486_v26 = vsub.s32 (!%p223_p10), 3, %v473_v21  ;;  %s683_s20 = sshll.u32 (!%p223_p10), %s229_s30, 5 }
  0x24   : > { %s262_s12 = scalar_lea.vmem (!%p223_p10), [#allocation4], %s683_s20 }
  0x25   : > { %s922_s10 = smov (!%p275_p11, %s684_s10), 15  ;;  %s709_s23 = sshll.u32 (%p859_p6), %s793_s14, 4 }
  0x26   : > { %360 = vmatpush1.bf16.msra.mxu0 %v761_v17  ;;  %403 = vmatpush1.bf16.msra.mxu1 %v762_v18  ;;  %s277_s19 = scalar_lea.vmem %s912_s2, %s922_s10  ;;  %s548_s26 = scalar_lea.vmem (%p859_p6), %s913_s3, %s709_s23 }
  0x27   : > { %v470_v24 = vld [vmem:[%s277_s19] sm:$0xf] }
  0x28   : > { %v475_v27 = vrot.slane %v470_v24, %v474_v22  ;;  %v483_v28 = vrot.slane %v470_v24, %v482_v23  ;;  %v479_v29 = vrot.slane %v470_v24, %v478_v25  ;;  %v487_v30 = vrot.slane %v470_v24, %v486_v26 }
  0x29   : > { %693 = vmatmul.mubr.msk.bf16.vlgmr.msra.gmra.mrb[0].mxu0 %vm353_vm0, %v304_v19  ;;  %694 = vmatmul.mubr.msk.bf16.vlgmr.msra.gmra.mrb[0].mxu1 %vm353_vm0, %v304_v19 }
  0xfc   : > { %v391_v31 = vpop.f32.mrb[0].mxu0  ;;  %v434_v32 = vpop.f32.mrb[0].mxu1 }
  0xfd   : > { %v492_v33 = vadd.f32 %v475_v27, %v391_v31  ;;  %v494_v34 = vadd.f32 %v483_v28, %v434_v32  ;;  %v393_v35 = vpop.f32.mrb[1].mxu0  ;;  %v436_v36 = vpop.f32.mrb[1].mxu1 }
  0xfe   : > { %v493_v37 = vadd.f32 %v479_v29, %v393_v35  ;;  %v495_v38 = vadd.f32 %v487_v30, %v436_v36  ;;  %v395_v39 = vpop.f32.mrb[2].mxu0  ;;  %v438_v40 = vpop.f32.mrb[2].mxu1 }
  0xff   : > { %v500_v41 = vmax.f32 %v492_v33, 0.0  ;;  %v502_v42 = vmax.f32 %v494_v34, 0.0  ;;  %v496_v43 = vadd.f32 %v475_v27, %v395_v39  ;;  %v498_v44 = vadd.f32 %v483_v28, %v438_v40  ;;  %v397_v45 = vpop.f32.mrb[3].mxu0  ;;  %v440_v46 = vpop.f32.mrb[3].mxu1 }
 0x100   : > { %v501_v47 = vmax.f32 %v493_v37, 0.0  ;;  %v503_v48 = vmax.f32 %v495_v38, 0.0  ;;  %v497_v49 = vadd.f32 %v479_v29, %v397_v45  ;;  %v499_v50 = vadd.f32 %v487_v30, %v440_v46  ;;  %542 = sbr.rel (!%p859_p6) target bundleno = 271 (0x10f), region = 67 }
 0x101   : > { %v504_v51 = vmax.f32 %v496_v43, 0.0  ;;  %v506_v52 = vmax.f32 %v498_v44, 0.0 }
 0x102   : > { %v705_v53 = vpack.c.bf16 %v501_v47, %v500_v41  ;;  %v706_v54 = vpack.c.bf16 %v503_v48, %v502_v42  ;;  %v505_v55 = vmax.f32 %v497_v49, 0.0  ;;  %v507_v56 = vmax.f32 %v499_v50, 0.0 }
 0x104   : > { %532 = vst [vmem:[%s262_s12] sm:$0xff] %v705_v53  ;;  %533 = vst [vmem:[%s262_s12 + $0x8] sm:$0xff] %v706_v54  ;;  %v707_v57 = vpack.c.bf16 %v505_v55, %v504_v51  ;;  %v708_v58 = vpack.c.bf16 %v507_v56, %v506_v52 }
 0x106   : > { %534 = vst [vmem:[%s262_s12 + $0x10] sm:$0xff] %v707_v57  ;;  %535 = vst [vmem:[%s262_s12 + $0x18] sm:$0xff] %v708_v58 }
 0x10b   : > { %v561_v59 = vld [vmem:[%s262_s12] sm:$0xff]  ;;  %v563_v60 = vld [vmem:[%s262_s12 + $0x8] sm:$0xff] }
 0x10c   : > { %562 = vst [vmem:[%s548_s26] sm:$0xff] %v561_v59  ;;  %564 = vst [vmem:[%s548_s26 + $0x8] sm:$0xff] %v563_v60 }
 0x10d   : > { %v565_v61 = vld [vmem:[%s262_s12 + $0x10] sm:$0xff]  ;;  %v567_v62 = vld [vmem:[%s262_s12 + $0x18] sm:$0xff] }
 0x10e   : > { %566 = vst [vmem:[%s548_s26 + $0x40] sm:$0xff] %v565_v61  ;;  %568 = vst [vmem:[%s548_s26 + $0x48] sm:$0xff] %v567_v62 }
 0x10f PF: > { %s13_s16 = sadd.s32 1, %s801_s16   ;;  %s915_s12 = smov %s789_s13 }
 0x110   : > { %p10_p12 = scmp.ge.s32.totalorder %s13_s16, 6   ;;  %s916_s13 = smov %s864_s22 }
 0x111   : > { %s917_s14 = smov %s797_s15  ;;  %s918_s15 = smov %s920_s17 }
 0x112   :  { %12 = sbr.rel (!%p10_p12) target bundleno = 3 (0x3), region = 127 }

// kernel: my_transformer_ts_forward.11
= control target key start
LH: loop header
LB: loop body
LE: loop exit
PB: predicated region body
PF: predicated region fallthrough
CT: control target
= control target key end

     0   :  { %s1143_s21 = smov 0   ;;  %s1145_s22 = smov 0   ;;  %s1279_s0 = inlined_call_operand.vmem [shape: bf16[16,2048], index: 0, kind: input, shape index: {}]   ;;  %s1280_s1 = inlined_call_operand.vmem [shape: bf16[2048,32], index: 1, kind: input, shape index: {}]   ;;  %s1281_s2 = inlined_call_operand.vmem [shape: f32[1,32], index: 2, kind: input, shape index: {}]   ;;  %s1282_s3 = inlined_call_operand.vmem [shape: f32[16,32], index: 3, kind: input, shape index: {}, may-alias: {3,6}]   ;;  %s1283_s4 = inlined_call_operand.vmem [shape: f32[1,32], index: 4, kind: input, shape index: {}]   ;;  %s1284_s5 = inlined_call_operand.vmem [shape: f32[1,32], index: 5, kind: input, shape index: {}]   ;;  %s1285_s6 = inlined_call_operand.vmem [shape: f32[16,32], index: 6, kind: output, shape index: {}, may-alias: {3,6}]  }
   0x1   :  { %s1147_s23 = smov 0   ;;  %s1149_s24 = smov 0  }
   0x2   :  { %s1151_s25 = smov 0  }
   0x3 LB: > { %s25_s26 = sadd.s32 1, %s1101_s24  ;;  %p44_p1 = scmp.ne.s32.totalorder %s1093_s22, %s1089_s21  ;;  %s1105_s25 = sphi %s1151_s25, %s16_s25   ;;  %s1101_s24 = sphi %s1149_s24, %s1289_s24   ;;  %s1097_s23 = sphi %s1147_s23, %s1288_s23   ;;  %s1093_s22 = sphi %s1145_s22, %s1287_s22   ;;  %s1089_s21 = sphi %s1143_s21, %s1286_s21  }
   0x4   : > { %p26_p0 = scmp.ge.s32.totalorder %s25_s26, 4  ;;  %p45_p2 = scmp.eq.s32.totalorder %s1105_s25, 0 }
   0x5   : > { %s37_s28 = sadd.s32 1, %s1093_s22  ;;  %p886_p5 = scmp.ge.s32.totalorder %s1105_s25, 4 }
   0x6   : > { %s1291_s26 = smov (%p26_p0, %s25_s26), 0  ;;  %p46_p3 = por %p45_p2, %p44_p1 }
   0x7   : > { %s33_s27 = ssub.s32 %s1101_s24, %s1291_s26  ;;  %229 = sbr.rel (%p886_p5) target bundleno = 21 (0x15), region = 32 }
   0x8   : > { %p35_p4 = scmp.eq.s32.totalorder %s33_s27, 0 }
   0xa   : > { %s1178_s29 = scalar_select %p35_p4, %s1093_s22, %s37_s28  }
   0xe   : > { %232 = sbr.rel (!%p46_p3) target bundleno = 21 (0x15), region = 36  ;;  %s234_s30 = sand.u32 (%p46_p3), 1, %s1093_s22  }
   0xf   : > { %s939_s7 = sshll.u32 (%p46_p3), %s1101_s24, 4  ;;  %s887_s8 = sshll.u32 (%p46_p3), %s234_s30, 5 }
  0x10   : > { %s242_s11 = scalar_lea.vmem (%p46_p3), %s1279_s0, %s939_s7  ;;  %s236_s12 = scalar_lea.vmem (%p46_p3), [#allocation3], %s887_s8 }
  0x11   : > { %v255_v0 = vld [vmem:[%s242_s11] sm:$0xff] (%p46_p3)  ;;  %v257_v1 = vld [vmem:[%s242_s11 + $0x8] sm:$0xff] (%p46_p3) }
  0x12   : > { %v259_v2 = vld [vmem:[%s242_s11 + $0x40] sm:$0xff] (%p46_p3)  ;;  %256 = vst [vmem:[%s236_s12] sm:$0xff] (%p46_p3), %v255_v0  ;;  %258 = vst [vmem:[%s236_s12 + $0x8] sm:$0xff] (%p46_p3), %v257_v1  ;;  %v261_v3 = vld [vmem:[%s242_s11 + $0x48] sm:$0xff] (%p46_p3) }
  0x13   : > { %260 = vst [vmem:[%s236_s12 + $0x10] sm:$0xff] (%p46_p3), %v259_v2  ;;  %262 = vst [vmem:[%s236_s12 + $0x18] sm:$0xff] (%p46_p3), %v261_v3 }
  0x15 PF: > { %p890_p6 = scmp.ge.s32.totalorder %s1105_s25, 1  ;;  %p276_p7 = scmp.lt.s32.totalorder %s1105_s25, 5 }
  0x17   : > { %p277_p8 = pnand %p890_p6, %p276_p7 }
  0x18   : > { %s283_s13 = sand.u32 (!%p277_p8), 1, %s1089_s21   ;;  %s892_s14 = sshll.u32 (!%p277_p8), %s1097_s23, 6 }
  0x19   : > { %280 = sbr.rel (%p277_p8) target bundleno = 623 (0x26f), region = 63  ;;  %s891_s15 = sshll.u32 (!%p277_p8), %s283_s13, 5 }
  0x1a   : > { %p325_p9 = scmp.lt.s32.totalorder (!%p277_p8), %s892_s14, 255  ;;  %s1195_s20 = scalar_lea.vmem (!%p277_p8), [#allocation3], %s891_s15 }
  0x1b   : > { %p894_p10 = scmp.ne.s32.totalorder (!%p277_p8), %s1097_s23, 0 }
  0x20   : > { %s1293_s14 = smov (!%p325_p9, %s892_s14), 255  ;;  %346 = sbr.rel (%p894_p10) target bundleno = 39 (0x27), region = 71 }
  0x21   : > { %s893_s16 = sshll.u32 %s1293_s14, 2  ;;  %vm347_vm0 = vcmask (!%p894_p10), 261120   ;;  %v1107_v4 = vmov (!%p894_p10), 0.0  }
  0x22   : > { %s1193_s19 = scalar_lea.vmem %s1280_s1, %s893_s16  ;;  %348 = vst.msk [vmem:[#allocation2] sm:$0xff] (!%p894_p10), %vm347_vm0, %v1107_v4  ;;  %349 = vst.msk [vmem:[#allocation2 + $0x8] sm:$0xff] (!%p894_p10), %vm347_vm0, %v1107_v4 }
  0x27 PF: > { %v1025_v5 = vld [vmem:[%s1193_s19 + $0x40] sm:$0xff]   ;;  %v1029_v9 = vld [vmem:[%s1193_s19 + $0x48] sm:$0xff]   ;;  %v1033_v13 = vld [vmem:[%s1193_s19 + $0x50] sm:$0xff]   ;;  %vm716_vm1 = vcmask 261120   ;;  %p931_p11 = scmp.ne.s32.totalorder %s1097_s23, 3 }
  0x28   : > { %v1026_v6 = vld [vmem:[%s1193_s19 + $0xc0] sm:$0xff]   ;;  %940 = vmatprep.subr.bf16.mxu0 %v1025_v5  ;;  %v1030_v10 = vld [vmem:[%s1193_s19 + $0xc8] sm:$0xff]   ;;  %v1034_v14 = vld [vmem:[%s1193_s19 + $0xd0] sm:$0xff]  }
  0x29   : > { %v1027_v7 = vld [vmem:[%s1193_s19] sm:$0xff]   ;;  %962 = vmatprep.subr.bf16.mxu1 %v1026_v6  ;;  %v1031_v11 = vld [vmem:[%s1193_s19 + $0x8] sm:$0xff]   ;;  %v1035_v15 = vld [vmem:[%s1193_s19 + $0x10] sm:$0xff]  }
  0x2a   : > { %v1028_v8 = vld [vmem:[%s1193_s19 + $0x80] sm:$0xff]   ;;  %941 = vmatpush3.bf16.msra.mxu0 %v1027_v7  ;;  %v1032_v12 = vld [vmem:[%s1193_s19 + $0x88] sm:$0xff]   ;;  %v1036_v16 = vld [vmem:[%s1193_s19 + $0x90] sm:$0xff]  }
  0x2b   : > { %963 = vmatpush3.bf16.msra.mxu1 %v1028_v8  ;;  %942 = vmatprep.subr.bf16.mxu0 %v1029_v9  ;;  %v1037_v17 = vld [vmem:[%s1193_s19 + $0x58] sm:$0xff]   ;;  %v1041_v21 = vld [vmem:[%s1193_s19 + $0x60] sm:$0xff]   ;;  %v1045_v25 = vld [vmem:[%s1193_s19 + $0x68] sm:$0xff]  }
  0x2c   : > { %964 = vmatprep.subr.bf16.mxu1 %v1030_v10  ;;  %v1038_v18 = vld [vmem:[%s1193_s19 + $0xd8] sm:$0xff]   ;;  %v1042_v22 = vld [vmem:[%s1193_s19 + $0xe0] sm:$0xff]   ;;  %v1046_v26 = vld [vmem:[%s1193_s19 + $0xe8] sm:$0xff]  }
  0x2d   : > { %v1039_v19 = vld [vmem:[%s1193_s19 + $0x18] sm:$0xff]   ;;  %v1043_v23 = vld [vmem:[%s1193_s19 + $0x20] sm:$0xff]   ;;  %v1047_v27 = vld [vmem:[%s1193_s19 + $0x28] sm:$0xff]  }
  0x2e   : > { %943 = vmatpush3.bf16.msra.mxu0 %v1031_v11  ;;  %v1040_v20 = vld [vmem:[%s1193_s19 + $0x98] sm:$0xff]   ;;  %v1044_v24 = vld [vmem:[%s1193_s19 + $0xa0] sm:$0xff]   ;;  %v1048_v28 = vld [vmem:[%s1193_s19 + $0xa8] sm:$0xff]  }
  0x2f   : > { %965 = vmatpush3.bf16.msra.mxu1 %v1032_v12  ;;  %944 = vmatprep.subr.bf16.mxu0 %v1033_v13  ;;  %v1049_v29 = vld [vmem:[%s1193_s19 + $0x70] sm:$0xff]   ;;  %v1053_v33 = vld [vmem:[%s1193_s19 + $0x78] sm:$0xff]   ;;  %v350_v50 = vld [vmem:[#allocation2] sm:$0xff] }
  0x30   : > { %966 = vmatprep.subr.bf16.mxu1 %v1034_v14  ;;  %v1050_v30 = vld [vmem:[%s1193_s19 + $0xf0] sm:$0xff]   ;;  %v1054_v34 = vld [vmem:[%s1193_s19 + $0xf8] sm:$0xff]   ;;  %v351_v55 = vld [vmem:[#allocation2 + $0x8] sm:$0xff] }
  0x31   : > { %v1051_v31 = vld [vmem:[%s1193_s19 + $0x30] sm:$0xff]   ;;  %v1055_v35 = vld [vmem:[%s1193_s19 + $0x38] sm:$0xff]   ;;  %v932_v60 = vld [vmem:[%s1281_s2] ss:$0 sm:$0xff] (!%p931_p11) }
  0x32   : > { %945 = vmatpush3.bf16.msra.mxu0 %v1035_v15  ;;  %v1052_v32 = vld [vmem:[%s1193_s19 + $0xb0] sm:$0xff]   ;;  %v1056_v36 = vld [vmem:[%s1193_s19 + $0xb8] sm:$0xff]   ;;  %v734_v61 = vld [vmem:[%s1282_s3] sm:$0xff] (!%p931_p11) }
  0x33   : > { %967 = vmatpush3.bf16.msra.mxu1 %v1036_v16  ;;  %946 = vmatprep.subr.bf16.mxu0 %v1037_v17  ;;  %v1057_v37 = vld [vmem:[%s1195_s20] ss:$16 sps:$4 sm:$0xff]   ;;  %v1059_v38 = vld [vmem:[%s1195_s20 + $0x4] ss:$16 sps:$4 sm:$0xff]   ;;  %v1060_v39 = vld [vmem:[%s1195_s20 + $0x8] ss:$16 sps:$4 sm:$0xff]  }
  0x34   : > { %968 = vmatprep.subr.bf16.mxu1 %v1038_v18  ;;  %v1062_v40 = vld [vmem:[%s1195_s20 + $0xc] ss:$16 sps:$4 sm:$0xff]   ;;  %664 = vmatprep.mubr.bf16.mxu0 %v1059_v38 }
  0x35   : > { %705 = vmatprep.mubr.bf16.mxu1 %v1062_v40  ;;  %v735_v0 = vld [vmem:[%s1282_s3 + $0x8] sm:$0xff] (!%p931_p11) }
  0x36   : > { %947 = vmatpush3.bf16.msra.mxu0 %v1039_v19 }
  0x37   : > { %969 = vmatpush3.bf16.msra.mxu1 %v1040_v20  ;;  %948 = vmatprep.subr.bf16.mxu0 %v1041_v21 }
  0x38   : > { %970 = vmatprep.subr.bf16.mxu1 %v1042_v22 }
  0x3a   : > { %949 = vmatpush3.bf16.msra.mxu0 %v1043_v23  ;;  %v933_v23 = vld [vmem:[%s1283_s4] ss:$0 sm:$0xff] (!%p931_p11) }
  0x3b   : > { %971 = vmatpush3.bf16.msra.mxu1 %v1044_v24  ;;  %950 = vmatprep.subr.bf16.mxu0 %v1045_v25  ;;  %v934_v25 = vld [vmem:[%s1284_s5] ss:$0 sm:$0xff] (!%p931_p11) }
  0x3c   : > { %972 = vmatprep.subr.bf16.mxu1 %v1046_v26 }
  0x3e   : > { %951 = vmatpush3.bf16.msra.mxu0 %v1047_v27 }
  0x3f   : > { %973 = vmatpush3.bf16.msra.mxu1 %v1048_v28  ;;  %952 = vmatprep.subr.bf16.mxu0 %v1049_v29 }
  0x40   : > { %974 = vmatprep.subr.bf16.mxu1 %v1050_v30 }
  0x42   : > { %953 = vmatpush3.bf16.msra.mxu0 %v1051_v31 }
  0x43   : > { %975 = vmatpush3.bf16.msra.mxu1 %v1052_v32  ;;  %954 = vmatprep.subr.bf16.mxu0 %v1053_v33 }
  0x44   : > { %976 = vmatprep.subr.bf16.mxu1 %v1054_v34 }
  0x46   : > { %955 = vmatpush3.bf16.msra.mxu0 %v1055_v35 }
  0x47   : > { %977 = vmatpush3.bf16.msra.mxu1 %v1056_v36 }
  0x49   : > { %665 = vmatmul.mubr.bf16.vlgmr.msra.gmra.mrb[0].mxu0 %v1057_v37 }
  0x4a   : > { %706 = vmatmul.mubr.bf16.vlgmr.msra.gmra.mrb[0].mxu1 %v1060_v39 }
 0x11c   : > { %v956_v41 = vpop.f32.mrb[0].mxu0 }
 0x11d   : > { %v978_v42 = vpop.f32.mrb[0].mxu1  ;;  %v957_v43 = vpop.f32.mrb[1].mxu0 }
 0x11e   : > { %v958_v44 = vadd.f32 %v957_v43, %v956_v41  ;;  %v979_v45 = vpop.f32.mrb[1].mxu1  ;;  %v959_v46 = vpop.f32.mrb[2].mxu0 }
 0x11f   : > { %v980_v47 = vadd.f32 %v979_v45, %v978_v42  ;;  %v981_v48 = vpop.f32.mrb[2].mxu1  ;;  %v960_v49 = vpop.f32.mrb[3].mxu0 }
 0x120   : > { %v961_v51 = vadd.f32 %v960_v49, %v959_v46  ;;  %v982_v52 = vpop.f32.mrb[3].mxu1 }
 0x121   : > { %v708_v53 = vadd.f32 %v980_v47, %v958_v44  ;;  %v983_v54 = vadd.f32 %v982_v52, %v981_v48  ;;  %722 = sbr.rel (%p931_p11) target bundleno = 623 (0x26f), region = 75 }
 0x123   : > { %v714_v56 = vadd.f32 %v708_v53, %v350_v50  ;;  %v711_v57 = vadd.f32 %v983_v54, %v961_v51 }
 0x125   : > { %717 = vst.msk [vmem:[#allocation2] sm:$0xff] %vm716_vm1, %v714_v56  ;;  %v715_v58 = vadd.f32 %v711_v57, %v351_v55 }
 0x127   : > { %718 = vst.msk [vmem:[#allocation2 + $0x8] sm:$0xff] %vm716_vm1, %v715_v58 }
 0x12c   : > { %v723_v59 = vld [vmem:[#allocation2] sm:$0xff] }
 0x12d   : > { %v732_v62 = vadd.f32 %v932_v60, %v723_v59 }
 0x12e   : > { %v724_v63 = vld [vmem:[#allocation2 + $0x8] sm:$0xff] }
 0x12f   : > { %v733_v1 = vadd.f32 %v932_v60, %v724_v63  ;;  %v736_v2 = vadd.f32 %v734_v61, %v732_v62 }
 0x131   : > { %v737_v3 = vadd.f32 %v735_v0, %v733_v1  ;;  %v738_v4 = vsel %vm716_vm1, %v736_v2, 0.0 }
 0x132   : > { %739 = vadd.xlane.f32.xlu0 %v738_v4 }
 0x133   : > { %v741_v5 = vsel %vm716_vm1, %v737_v3, 0.0 }
 0x136   : > { %742 = vadd.xlane.f32.xlu0 %v741_v5 }
 0x1bf   : > { %v740_v6 = vpop.xlane.xlu0 %739 }
 0x1c0   : > { %v745_v7 = vmul.f32 0.03125, %v740_v6 }
 0x1c2   : > { %v747_v8 = vsub.f32 %v736_v2, %v745_v7 }
 0x1c3   : > { %v743_v9 = vpop.xlane.xlu0 %742 }
 0x1c4   : > { %v746_v10 = vmul.f32 0.03125, %v743_v9  ;;  %v749_v11 = vmul.f32 %v747_v8, %v747_v8 }
 0x1c6   : > { %v748_v12 = vsub.f32 %v737_v3, %v746_v10  ;;  %v751_v13 = vsel %vm716_vm1, %v749_v11, 0.0 }
 0x1c7   : > { %752 = vadd.xlane.f32.xlu1 %v751_v13 }
 0x1c8   : > { %v750_v14 = vmul.f32 %v748_v12, %v748_v12 }
 0x1ca   : > { %v754_v15 = vsel %vm716_vm1, %v750_v14, 0.0 }
 0x1cb   : > { %755 = vadd.xlane.f32.xlu1 %v754_v15 }
 0x254   : > { %v753_v16 = vpop.xlane.xlu1 %752 }
 0x255   : > { %v757_v17 = vmul.f32 0.03125, %v753_v16 }
 0x257   : > { %v759_v18 = vadd.f32 1e-05, %v757_v17 }
 0x258   : > { %v756_v19 = vpop.xlane.xlu1 %755 }
 0x259   : > { %1063 = vrsqrt.f32 %v759_v18  ;;  %v758_v20 = vmul.f32 0.03125, %v756_v19 }
 0x25b   : > { %v760_v21 = vadd.f32 1e-05, %v758_v20 }
 0x25d   : > { %1065 = vrsqrt.f32 %v760_v21 }
 0x263   : > { %v1064_v22 = vpop.eup %1063 }
 0x264   : > { %v763_v24 = vmul.f32 %v1064_v22, %v747_v8 }
 0x266   : > { %v772_v26 = vmul.f32 %v933_v23, %v763_v24 }
 0x267   : > { %v1066_v27 = vpop.eup %1065 }
 0x268   : > { %v781_v28 = vadd.f32 %v934_v25, %v772_v26  ;;  %v764_v29 = vmul.f32 %v1066_v27, %v748_v12 }
 0x26a   : > { %783 = vst.msk [vmem:[%s1285_s6] sm:$0xff] %vm716_vm1, %v781_v28  ;;  %v773_v30 = vmul.f32 %v933_v23, %v764_v29 }
 0x26c   : > { %v782_v31 = vadd.f32 %v934_v25, %v773_v30 }
 0x26e   : > { %784 = vst.msk [vmem:[%s1285_s6 + $0x8] sm:$0xff] %vm716_vm1, %v782_v31 }
 0x26f PF: > { %s16_s25 = sadd.s32 1, %s1105_s25   ;;  %s1286_s21 = smov %s1093_s22 }
 0x270   : > { %p13_p12 = scmp.ge.s32.totalorder %s16_s25, 6   ;;  %s1287_s22 = smov %s1178_s29 }
 0x271   : > { %s1288_s23 = smov %s1101_s24  ;;  %s1289_s24 = smov %s1291_s26 }
 0x272   :  { %15 = sbr.rel (!%p13_p12) target bundleno = 3 (0x3), region = 116 }

// kernel: my_transformer_ts_forward.15
= control target key start
LH: loop header
LB: loop body
LE: loop exit
PB: predicated region body
PF: predicated region fallthrough
CT: control target
= control target key end

     0   :  { %v130_v0 = vmov 0.0   ;;  %vm131_vm0 = vmmov 0   ;;  %vm42_vm1 = vcmask 261120   ;;  %s173_s1 = inlined_call_operand.vmem [shape: bf16[32,128], index: 1, kind: input, shape index: {}]   ;;  %s174_s0 = inlined_call_operand.vmem [shape: f32[16,32], index: 0, kind: input, shape index: {}]   ;;  %s175_s2 = inlined_call_operand.vmem [shape: f32[1,128], index: 2, kind: input, shape index: {}]   ;;  %s176_s3 = inlined_call_operand.vmem [shape: f32[16,128], index: 3, kind: output, shape index: {}]  }
   0x1   :  { %118 = vmatprep.subr.bf16.mxu0 %v130_v0  ;;  %v128_v1 = vld [vmem:[%s173_s1] sm:$0xff]   ;;  %122 = vmatprep.mubr.msk.bf16.mxu0 %vm131_vm0, %v130_v0  ;;  %v129_v2 = vld [vmem:[%s173_s1 + $0x8] sm:$0xff]  }
   0x2   :  { %119 = vmatpush3.bf16.msra.mxu0 %v128_v1  ;;  %v23_v3 = vld [vmem:[%s174_s0] sm:$0xff]  ;;  %v24_v4 = vld [vmem:[%s174_s0 + $0x8] sm:$0xff] }
   0x3   :  { %120 = vmatprep.subr.bf16.mxu0 %v130_v0  ;;  %v25_v5 = vpack.c.bf16 %v24_v4, %v23_v3  ;;  %v114_v6 = vld [vmem:[%s175_s2] ss:$0 sm:$0xff] }
   0x6   :  { %121 = vmatpush3.bf16.msra.mxu0 %v129_v2 }
   0x9   :  { %123 = vmatmul.mubr.msk.bf16.vlgmr.msra.gmra.mrb[0].mxu0 %vm42_vm1, %v25_v5 }
  0xdc   :  { %v80_v7 = vpop.f32.mrb[0].mxu0 }
  0xdd   :  { %v103_v8 = vadd.f32 %v114_v6, %v80_v7  ;;  %v124_v9 = vpop.f32.mrb[1].mxu0 }
  0xde   :  { %v83_v10 = vpop.f32.mrb[2].mxu0 }
  0xdf   :  { %105 = vst [vmem:[%s176_s3] sm:$0xff] %v103_v8  ;;  %v104_v11 = vadd.f32 %v114_v6, %v83_v10  ;;  %v125_v12 = vpop.f32.mrb[3].mxu0 }
  0xe1   :  { %106 = vst [vmem:[%s176_s3 + $0x8] sm:$0xff] %v104_v11 }

</bundles_post_ra>
